<compile_context>
chip_gen: v5e
topology: v5e:2x2
jax: 0.10.0
libtpu: 0.0.40
codegen_flags: <defaults>
</compile_context>

<pallas_src>
import jax
import jax.numpy as jnp
from jax.experimental import pallas as pl
from jax.experimental.pallas import tpu as pltpu

# ---- logical shapes (module: c_dim = len(range(1, 6)) = 5, latent = kappa = 40) ----
BATCH = 256
C_DIM = 5
LATENT_DIM = 40
DATA_DIM = 16
HIDDEN_C = 16          # c_processor hidden
HIDDEN_N = 16          # net hidden

LANES = 128            # lane width of the packed parameter slab
MAX_TILE_B = 2048      # cap on rows per grid step (keeps per-step VMEM tiny everywhere)

assert LATENT_DIM % 8 == 0, "band offsets below assume an 8-aligned latent dim"

# ---- packed parameter slab row layout (every band starts on an 8-row boundary) ----
R_W1 = 0                          # rows 0:8    W1: rows 0:5 = w1 (5,16) in lanes 0:16
R_W2 = R_W1 + 8                   # rows 8:136  W2 fused band, 128 rows (rows 16:128 zero):
                                  #   lanes 0:LATENT = weight head, LATENT:LATENT+5 = c1 head
R_W3Z = R_W2 + LANES              # rows 136:176  W3 rows acting on z*weight (40,16) in lanes 0:16
R_W3C = R_W3Z + LATENT_DIM        # rows 176:184  W3 rows acting on c1: rows 0:5 used
R_W4 = R_W3C + 8                  # rows 184:312  W4 band, 128 rows (rows 16:128 zero), lanes 0:16
R_B1 = R_W4 + LANES               # row 312  b1 (lanes 0:16)
R_B2 = R_B1 + 1                   # row 313  b2 fused, reordered [weight, c1] (lanes 0:45)
R_B3 = R_B1 + 2                   # row 314  b3 (lanes 0:16)
R_B4 = R_B1 + 3                   # row 315  b4 (lanes 0:16)
R_A1 = R_B1 + 4                   # row 316  PReLU a1 (lanes 0:16)
R_A3 = R_B1 + 5                   # row 317  PReLU a3 (lanes 0:16)
N_ROWS = ((R_A3 + 1 + 7) // 8) * 8   # 320

# NOTE: correctness relies on the unset slab regions staying exactly zero
# (W1 rows 5:8 / lanes 16:, W2 rows 16: / lanes 45:, W3C rows 5:, W4 rows 16: / lanes 16:,
#  all bias/PReLU rows beyond their logical width).  pack_params builds on jnp.zeros and only
#  .set()s the logical regions, so this holds by construction.


def syn_generator_kernel(z_ref, c_ref, p_ref, out_ref):
    z = z_ref[...]                       # (TB, LATENT_DIM)
    c = c_ref[...]                       # (TB, C_DIM)

    # ---- c_processor layer 1: Linear(5->16) + PReLU, computed at full 128 lanes ----
    # (K=5 contraction; lanes 16:128 of the band/bias are zero -> h lanes 16:128 == 0)
    h = (jnp.dot(c, p_ref[R_W1:R_W1 + C_DIM, :], preferred_element_type=jnp.float32)
         + p_ref[R_B1:R_B1 + 1, :])
    h = jnp.where(h > 0, h, p_ref[R_A1:R_A1 + 1, :] * h)

    # ---- c_processor layer 2, fused heads: K=128 dot against the zero-row-padded band ----
    #      lanes 0:LATENT = "weight" head, LATENT:LATENT+5 = c1 head, rest zero
    o2 = (jnp.dot(h, p_ref[R_W2:R_W2 + LANES, :], preferred_element_type=jnp.float32)
          + p_ref[R_B2:R_B2 + 1, :])
    wgt = jax.nn.sigmoid(o2[:, 0:LATENT_DIM])                       # (TB, 40) on EUP
    c1 = o2[:, LATENT_DIM:LATENT_DIM + C_DIM]                       # (TB, 5)
    zw = wgt * z                                                    # z = sigmoid(weight) * z

    # ---- net layer 1: cat([zw, c1]) @ W3 decomposed into two dots, + PReLU ----
    h2 = (jnp.dot(zw, p_ref[R_W3Z:R_W3Z + LATENT_DIM, :], preferred_element_type=jnp.float32)
          + jnp.dot(c1, p_ref[R_W3C:R_W3C + C_DIM, :], preferred_element_type=jnp.float32)
          + p_ref[R_B3:R_B3 + 1, :])
    h2 = jnp.where(h2 > 0, h2, p_ref[R_A3:R_A3 + 1, :] * h2)        # lanes 16:128 stay 0

    # ---- net layer 2: K=128 dot; store only the 16 real output lanes ----
    y = (jnp.dot(h2, p_ref[R_W4:R_W4 + LANES, :], preferred_element_type=jnp.float32)
         + p_ref[R_B4:R_B4 + 1, :])
    out_ref[...] = y[:, 0:DATA_DIM]


def _num_tensorcores():
    """Best-effort TensorCores-per-chip: 2 on v7x (and megacore v4/v5p), else 1 (v5e/v6e)."""
    try:
        kind = jax.devices()[0].device_kind.lower()
    except Exception:
        return 1
    return 2 if any(tag in kind for tag in ("v7", "v4", "v5p", "v5 p")) else 1


def _choose_tile_b(batch, n_cores):
    """One grid step per TensorCore when possible; cap tile size for very large batches."""
    tile = batch
    if n_cores > 1 and batch % n_cores == 0 and (batch // n_cores) % 8 == 0:
        tile = batch // n_cores
    while tile > MAX_TILE_B and tile % 16 == 0:   # halving keeps tile | batch and tile % 8 == 0
        tile //= 2
    return tile


def syn_generator_forward(z, c, packed_params, *, grid_steps=None):
    """z: (B, LATENT_DIM) f32, c: (B, C_DIM) f32, packed_params: (N_ROWS, 128) f32."""
    B = z.shape[0]
    assert z.shape == (B, LATENT_DIM) and c.shape == (B, C_DIM)
    n_cores = grid_steps if grid_steps is not None else _num_tensorcores()
    tile_b = _choose_tile_b(B, n_cores)
    assert B % tile_b == 0

    return pl.pallas_call(
        syn_generator_kernel,
        out_shape=jax.ShapeDtypeStruct((B, DATA_DIM), jnp.float32),
        grid_spec=pltpu.PrefetchScalarGridSpec(
            num_scalar_prefetch=0,
            grid=(B // tile_b,),
            in_specs=[
                pl.BlockSpec((tile_b, LATENT_DIM), lambda i: (i, 0)),   # z tiles
                pl.BlockSpec((tile_b, C_DIM), lambda i: (i, 0)),        # c tiles (no wrapper pad)
                pl.BlockSpec((N_ROWS, LANES), lambda i: (0, 0)),        # params: VMEM-resident
            ],
            out_specs=pl.BlockSpec((tile_b, DATA_DIM), lambda i: (i, 0)),  # lane-16 out, no slab
        ),
        compiler_params=pltpu.CompilerParams(
            dimension_semantics=("parallel",),   # shards batch steps across TCs on v7x/megacore
        ),
    )(z, c, packed_params)


def pack_params(w1, b1, w2, b2, w3, b3, w4, b4, a1, a3):
    """Build the single zero-padded (N_ROWS, 128) parameter slab (done once at init)."""
    P = jnp.zeros((N_ROWS, LANES), jnp.float32)
    # W1 (5,16) -> rows 0:5, lanes 0:16
    P = P.at[R_W1:R_W1 + C_DIM, 0:HIDDEN_C].set(w1)
    # W2 (16, 45) fused + head-reordered: weight head -> lanes 0:40, c1 head -> lanes 40:45
    P = P.at[R_W2:R_W2 + HIDDEN_C, 0:LATENT_DIM].set(w2[:, C_DIM:])
    P = P.at[R_W2:R_W2 + HIDDEN_C, LATENT_DIM:LATENT_DIM + C_DIM].set(w2[:, :C_DIM])
    # W3 (45,16): rows 0:40 act on z*weight, rows 40:45 act on c1
    P = P.at[R_W3Z:R_W3Z + LATENT_DIM, 0:HIDDEN_N].set(w3[:LATENT_DIM])
    P = P.at[R_W3C:R_W3C + C_DIM, 0:HIDDEN_N].set(w3[LATENT_DIM:])
    # W4 (16,16) -> rows 0:16, lanes 0:16
    P = P.at[R_W4:R_W4 + HIDDEN_N, 0:DATA_DIM].set(w4)
    # biases (b2 reordered to match fused W2) + PReLU params
    P = P.at[R_B1, 0:HIDDEN_C].set(b1)
    P = P.at[R_B2, 0:LATENT_DIM].set(b2[C_DIM:])
    P = P.at[R_B2, LATENT_DIM:LATENT_DIM + C_DIM].set(b2[:C_DIM])
    P = P.at[R_B3, 0:HIDDEN_N].set(b3)
    P = P.at[R_B4, 0:DATA_DIM].set(b4)
    P = P.at[R_A1, 0:HIDDEN_C].set(a1)
    P = P.at[R_A3, 0:HIDDEN_N].set(a3)
    return P


def init_params(key):
    """PyTorch-like init: Linear ~ U(-1/sqrt(fan_in), +), PReLU init 0.25."""
    ks = jax.random.split(key, 8)

    def linear(kw, kb, fan_in, fan_out):
        bound = 1.0 / jnp.sqrt(float(fan_in))
        w = jax.random.uniform(kw, (fan_in, fan_out), jnp.float32, -bound, bound)
        b = jax.random.uniform(kb, (fan_out,), jnp.float32, -bound, bound)
        return w, b

    w1, b1 = linear(ks[0], ks[1], C_DIM, HIDDEN_C)
    w2, b2 = linear(ks[2], ks[3], HIDDEN_C, C_DIM + LATENT_DIM)   # heads: [c1(5), weight(40)]
    w3, b3 = linear(ks[4], ks[5], LATENT_DIM + C_DIM, HIDDEN_N)   # input order: [z(40), c1(5)]
    w4, b4 = linear(ks[6], ks[7], HIDDEN_N, DATA_DIM)
    a1 = jnp.float32(0.25)
    a3 = jnp.float32(0.25)
    logical = (w1, b1, w2, b2, w3, b3, w4, b4, a1, a3)
    packed = pack_params(*logical)        # packed/padded ONCE, reused every call
    return logical, packed


def reference_forward(z, c, w1, b1, w2, b2, w3, b3, w4, b4, a1, a3):
    """Pure-JAX reference matching the PyTorch module (atten=True)."""
    h = c @ w1 + b1
    h = jnp.where(h > 0, h, a1 * h)                      # PReLU (single shared param)
    o = h @ w2 + b2
    c1, wgt = o[:, :C_DIM], o[:, C_DIM:]                 # param_dims = [c_dim, latent_dim]
    zw = jax.nn.sigmoid(wgt) * z
    x = jnp.concatenate([zw, c1], axis=1)                # cat([z, c1], dim=1)
    h2 = x @ w3 + b3
    h2 = jnp.where(h2 > 0, h2, a3 * h2)
    return h2 @ w4 + b4


if __name__ == "__main__":
    key = jax.random.PRNGKey(0)
    kz, kc, kp = jax.random.split(key, 3)
    z = jax.random.normal(kz, (BATCH, LATENT_DIM), dtype=jnp.float32)
    c = jax.random.normal(kc, (BATCH, C_DIM), dtype=jnp.float32)
    logical_params, packed_params = init_params(kp)

    out = jax.block_until_ready(syn_generator_forward(z, c, packed_params))

    ref = reference_forward(z, c, *logical_params)
    assert out.shape == (BATCH, DATA_DIM)
    assert jnp.allclose(out, ref, atol=1e-5, rtol=1e-5), "mismatch vs pure-JAX reference"
    print("KERNEL_OK")
</pallas_src>

<mosaic_0001>
module attributes {stable_mosaic.version = 11 : i64} {
  func.func @syn_generator_kernel(%arg0: i32, %arg1: memref<256x40xf32, #tpu.memory_space<vmem>>, %arg2: memref<256x5xf32, #tpu.memory_space<vmem>>, %arg3: memref<320x128xf32, #tpu.memory_space<vmem>>, %arg4: memref<256x16xf32, #tpu.memory_space<vmem>>) attributes {dimension_semantics = [#tpu.dimension_semantics<parallel>], iteration_bounds = array<i64: 1>, scalar_prefetch = 0 : i64, scratch_operands = 0 : i64, tpu.core_type = #tpu.core_type<tc>, window_params = [{transform_indices = @transform_0, window_bounds = array<i64: 256, 40>}, {transform_indices = @transform_1, window_bounds = array<i64: 256, 5>}, {pipeline_mode = #tpu.pipeline_mode<synchronous>, transform_indices = @transform_2, window_bounds = array<i64: 320, 128>}, {transform_indices = @transform_3, window_bounds = array<i64: 256, 16>}]} {
    %c0 = arith.constant 0 : index
    %c0_0 = arith.constant 0 : index
    %0 = vector.load %arg1[%c0, %c0_0] : memref<256x40xf32, #tpu.memory_space<vmem>>, vector<256x40xf32>
    %c0_1 = arith.constant 0 : index
    %c0_2 = arith.constant 0 : index
    %1 = vector.load %arg2[%c0_1, %c0_2] : memref<256x5xf32, #tpu.memory_space<vmem>>, vector<256x5xf32>
    %c0_3 = arith.constant 0 : index
    %c0_4 = arith.constant 0 : index
    %2 = vector.load %arg3[%c0_3, %c0_4] : memref<320x128xf32, #tpu.memory_space<vmem>>, vector<5x128xf32>
    %cst = arith.constant dense<0.000000e+00> : vector<256x128xf32>
    %3 = tpu.matmul %1, %2, %cst {dimension_numbers = #tpu.dot_dimension_numbers<[1], [0], [0], [1], [0, 0, 1, 1], [], []>} : vector<256x5xf32>, vector<5x128xf32>, vector<256x128xf32> -> vector<256x128xf32>
    %c312 = arith.constant 312 : index
    %c0_5 = arith.constant 0 : index
    %4 = vector.load %arg3[%c312, %c0_5] : memref<320x128xf32, #tpu.memory_space<vmem>>, vector<1x128xf32>
    %5 = vector.broadcast %4 : vector<1x128xf32> to vector<256x128xf32>
    %6 = arith.addf %3, %5 : vector<256x128xf32>
    %cst_6 = arith.constant 0.000000e+00 : f32
    %7 = vector.broadcast %cst_6 : f32 to vector<256x128xf32>
    %8 = arith.cmpf ogt, %6, %7 : vector<256x128xf32>
    %c316 = arith.constant 316 : index
    %c0_7 = arith.constant 0 : index
    %9 = vector.load %arg3[%c316, %c0_7] : memref<320x128xf32, #tpu.memory_space<vmem>>, vector<1x128xf32>
    %10 = vector.broadcast %9 : vector<1x128xf32> to vector<256x128xf32>
    %11 = arith.mulf %10, %6 : vector<256x128xf32>
    %12 = arith.select %8, %6, %11 : vector<256x128xi1>, vector<256x128xf32>
    %c8 = arith.constant 8 : index
    %c0_8 = arith.constant 0 : index
    %13 = vector.load %arg3[%c8, %c0_8] : memref<320x128xf32, #tpu.memory_space<vmem>>, vector<128x128xf32>
    %cst_9 = arith.constant dense<0.000000e+00> : vector<256x128xf32>
    %14 = tpu.matmul %12, %13, %cst_9 {dimension_numbers = #tpu.dot_dimension_numbers<[1], [0], [0], [1], [0, 0, 1, 1], [], []>} : vector<256x128xf32>, vector<128x128xf32>, vector<256x128xf32> -> vector<256x128xf32>
    %c313 = arith.constant 313 : index
    %c0_10 = arith.constant 0 : index
    %15 = vector.load %arg3[%c313, %c0_10] : memref<320x128xf32, #tpu.memory_space<vmem>>, vector<1x128xf32>
    %16 = vector.broadcast %15 : vector<1x128xf32> to vector<256x128xf32>
    %17 = arith.addf %14, %16 : vector<256x128xf32>
    %18 = vector.extract_strided_slice %17 {offsets = [0, 0], sizes = [256, 40], strides = [1, 1]} : vector<256x128xf32> to vector<256x40xf32>
    %19 = arith.negf %18 : vector<256x40xf32>
    %20 = math.exp %19 : vector<256x40xf32>
    %cst_11 = arith.constant 1.000000e+00 : f32
    %21 = vector.broadcast %cst_11 : f32 to vector<256x40xf32>
    %22 = arith.addf %21, %20 : vector<256x40xf32>
    %23 = arith.divf %21, %22 : vector<256x40xf32>
    %24 = vector.extract_strided_slice %17 {offsets = [0, 40], sizes = [256, 5], strides = [1, 1]} : vector<256x128xf32> to vector<256x5xf32>
    %25 = arith.mulf %23, %0 : vector<256x40xf32>
    %c136 = arith.constant 136 : index
    %c0_12 = arith.constant 0 : index
    %26 = vector.load %arg3[%c136, %c0_12] : memref<320x128xf32, #tpu.memory_space<vmem>>, vector<40x128xf32>
    %cst_13 = arith.constant dense<0.000000e+00> : vector<256x128xf32>
    %27 = tpu.matmul %25, %26, %cst_13 {dimension_numbers = #tpu.dot_dimension_numbers<[1], [0], [0], [1], [0, 0, 1, 1], [], []>} : vector<256x40xf32>, vector<40x128xf32>, vector<256x128xf32> -> vector<256x128xf32>
    %c176 = arith.constant 176 : index
    %c0_14 = arith.constant 0 : index
    %28 = vector.load %arg3[%c176, %c0_14] : memref<320x128xf32, #tpu.memory_space<vmem>>, vector<5x128xf32>
    %cst_15 = arith.constant dense<0.000000e+00> : vector<256x128xf32>
    %29 = tpu.matmul %24, %28, %cst_15 {dimension_numbers = #tpu.dot_dimension_numbers<[1], [0], [0], [1], [0, 0, 1, 1], [], []>} : vector<256x5xf32>, vector<5x128xf32>, vector<256x128xf32> -> vector<256x128xf32>
    %30 = arith.addf %27, %29 : vector<256x128xf32>
    %c314 = arith.constant 314 : index
    %c0_16 = arith.constant 0 : index
    %31 = vector.load %arg3[%c314, %c0_16] : memref<320x128xf32, #tpu.memory_space<vmem>>, vector<1x128xf32>
    %32 = vector.broadcast %31 : vector<1x128xf32> to vector<256x128xf32>
    %33 = arith.addf %30, %32 : vector<256x128xf32>
    %cst_17 = arith.constant 0.000000e+00 : f32
    %34 = vector.broadcast %cst_17 : f32 to vector<256x128xf32>
    %35 = arith.cmpf ogt, %33, %34 : vector<256x128xf32>
    %c317 = arith.constant 317 : index
    %c0_18 = arith.constant 0 : index
    %36 = vector.load %arg3[%c317, %c0_18] : memref<320x128xf32, #tpu.memory_space<vmem>>, vector<1x128xf32>
    %37 = vector.broadcast %36 : vector<1x128xf32> to vector<256x128xf32>
    %38 = arith.mulf %37, %33 : vector<256x128xf32>
    %39 = arith.select %35, %33, %38 : vector<256x128xi1>, vector<256x128xf32>
    %c184 = arith.constant 184 : index
    %c0_19 = arith.constant 0 : index
    %40 = vector.load %arg3[%c184, %c0_19] : memref<320x128xf32, #tpu.memory_space<vmem>>, vector<128x128xf32>
    %cst_20 = arith.constant dense<0.000000e+00> : vector<256x128xf32>
    %41 = tpu.matmul %39, %40, %cst_20 {dimension_numbers = #tpu.dot_dimension_numbers<[1], [0], [0], [1], [0, 0, 1, 1], [], []>} : vector<256x128xf32>, vector<128x128xf32>, vector<256x128xf32> -> vector<256x128xf32>
    %c315 = arith.constant 315 : index
    %c0_21 = arith.constant 0 : index
    %42 = vector.load %arg3[%c315, %c0_21] : memref<320x128xf32, #tpu.memory_space<vmem>>, vector<1x128xf32>
    %43 = vector.broadcast %42 : vector<1x128xf32> to vector<256x128xf32>
    %44 = arith.addf %41, %43 : vector<256x128xf32>
    %45 = vector.extract_strided_slice %44 {offsets = [0, 0], sizes = [256, 16], strides = [1, 1]} : vector<256x128xf32> to vector<256x16xf32>
    %c0_22 = arith.constant 0 : index
    %c0_23 = arith.constant 0 : index
    %46 = vector.load %arg4[%c0_22, %c0_23] : memref<256x16xf32, #tpu.memory_space<vmem>>, vector<256x16xf32>
    tpu.vector_store %arg4[%c0_22, %c0_23], %45 {strides = array<i32>} : memref<256x16xf32, #tpu.memory_space<vmem>>, vector<256x16xf32>,
    return
  }
  func.func @transform_0(%arg0: i32) -> (i32, i32) {
    %c0_i32 = arith.constant 0 : i32
    %c0_i32_0 = arith.constant 0 : i32
    return %arg0, %c0_i32 : i32, i32
  }
  func.func @transform_1(%arg0: i32) -> (i32, i32) {
    %c0_i32 = arith.constant 0 : i32
    %c0_i32_0 = arith.constant 0 : i32
    return %arg0, %c0_i32 : i32, i32
  }
  func.func @transform_2(%arg0: i32) -> (i32, i32) {
    %c0_i32 = arith.constant 0 : i32
    %c0_i32_0 = arith.constant 0 : i32
    %c0_i32_1 = arith.constant 0 : i32
    return %c0_i32, %c0_i32_0 : i32, i32
  }
  func.func @transform_3(%arg0: i32) -> (i32, i32) {
    %c0_i32 = arith.constant 0 : i32
    %c0_i32_0 = arith.constant 0 : i32
    return %arg0, %c0_i32 : i32, i32
  }
}

</mosaic_0001>

<bundles_post_ra>
// kernel: tpu_custom_call.1
= control target key start
LH: loop header
LB: loop body
LE: loop exit
PB: predicated region body
PF: predicated region fallthrough
CT: control target
= control target key end

     0   :  { %vm178_vm0 = vcmask 1044480   ;;  %vm81_vm1 = vcmask 39936   ;;  %s2243_s17 = smov 88   ;;  %s3297_s2 = inlined_call_operand.vmem [shape: f32[320,128], index: 2, kind: input, shape index: {}]   ;;  %s3298_s1 = inlined_call_operand.vmem [shape: f32[256,5], index: 1, kind: input, shape index: {}]   ;;  %s3299_s0 = inlined_call_operand.vmem [shape: f32[256,40], index: 0, kind: input, shape index: {}]   ;;  %s3300_s3 = inlined_call_operand.vmem [shape: f32[256,16], index: 3, kind: output, shape index: {}]  }
   0x1   :  { %v78_v0 = vld [vmem:[%s3297_s2] sm:$0x1f]  ;;  %v47_v2 = vld [vmem:[%s3298_s1 + $0x8] sm:$0xff]  ;;  %v48_v3 = vld [vmem:[%s3298_s1 + $0x10] sm:$0xff] }
   0x2   :  { %v46_v1 = vld [vmem:[%s3298_s1] sm:$0xff]  ;;  %1956 = vmatpush.msk.msra.mxu0 %vm178_vm0, %v78_v0  ;;  %2086 = vmatpush.msk.msra.mxu1 %vm178_vm0, %v78_v0  ;;  %v49_v4 = vld [vmem:[%s3298_s1 + $0x18] sm:$0xff]  ;;  %v51_v6 = vld [vmem:[%s3298_s1 + $0x28] sm:$0xff] }
   0x3   :  { %1957 = vmatmul.msk.f32.vlgmr.msra.gmra.mxu0 %vm81_vm1, %v46_v1  ;;  %2087 = vmatpush.msk.msra.mxu2 %vm178_vm0, %v78_v0  ;;  %v50_v5 = vld [vmem:[%s3298_s1 + $0x20] sm:$0xff]  ;;  %v56_v7 = vld [vmem:[%s3298_s1 + $0x50] sm:$0xff]  ;;  %v407_v9 = vld [vmem:[%s3297_s2 + $0x78] sm:$0xff] }
   0x4   :  { %2088 = vmatpush.msk.msra.mxu3 %vm178_vm0, %v78_v0  ;;  %v408_v8 = vld [vmem:[%s3297_s2 + $0x80] sm:$0xff]  ;;  %1967 = vmatmul.msk.f32.vlgmr.msra.gmra.mxu1 %vm81_vm1, %v56_v7  ;;  %v406_v10 = vld [vmem:[%s3297_s2 + $0x70] sm:$0xff]  ;;  %v61_v11 = vld [vmem:[%s3298_s1 + $0x78] sm:$0xff] }
   0x5   :  { %411 = vmatpush.msrb.mxu1 %v408_v8  ;;  %v52_v12 = vld [vmem:[%s3298_s1 + $0x30] sm:$0xff]  ;;  %v405_v13 = vld [vmem:[%s3297_s2 + $0x68] sm:$0xff]  ;;  %1972 = vmatmul.msk.f32.vlgmr.msra.gmra.mxu2 %vm81_vm1, %v61_v11  ;;  %v57_v14 = vld [vmem:[%s3298_s1 + $0x58] sm:$0xff] }
   0x6   :  { %v404_v15 = vld [vmem:[%s3297_s2 + $0x60] sm:$0xff]  ;;  %v403_v16 = vld [vmem:[%s3297_s2 + $0x58] sm:$0xff]  ;;  %v402_v18 = vld [vmem:[%s3297_s2 + $0x50] sm:$0xff] }
   0x7   :  { %412 = vmatpush.msrb.mxu1 %v407_v9  ;;  %v62_v17 = vld [vmem:[%s3298_s1 + $0x80] sm:$0xff]  ;;  %v53_v19 = vld [vmem:[%s3298_s1 + $0x38] sm:$0xff]  ;;  %v401_v20 = vld [vmem:[%s3297_s2 + $0x48] sm:$0xff] }
   0x8   :  { %v58_v21 = vld [vmem:[%s3298_s1 + $0x60] sm:$0xff]  ;;  %v399_v23 = vld [vmem:[%s3297_s2 + $0x38] sm:$0xff]  ;;  %v398_v24 = vld [vmem:[%s3297_s2 + $0x30] sm:$0xff] }
   0x9   :  { %413 = vmatpush.msrb.mxu1 %v406_v10  ;;  %v400_v22 = vld [vmem:[%s3297_s2 + $0x40] sm:$0xff]  ;;  %v397_v26 = vld [vmem:[%s3297_s2 + $0x28] sm:$0xff]  ;;  %v395_v29 = vld [vmem:[%s3297_s2 + $0x18] sm:$0xff] }
   0xa   :  { %v54_v25 = vld [vmem:[%s3298_s1 + $0x40] sm:$0xff]  ;;  %v59_v27 = vld [vmem:[%s3298_s1 + $0x68] sm:$0xff]  ;;  %v60_v31 = vld [vmem:[%s3298_s1 + $0x70] sm:$0xff] }
   0xb   :  { %1958 = vmatmul.msk.f32.gmra.mxu0 %vm81_vm1, %v47_v2  ;;  %414 = vmatpush.msrb.mxu1 %v405_v13  ;;  %v396_v28 = vld [vmem:[%s3297_s2 + $0x20] sm:$0xff]  ;;  %v55_v30 = vld [vmem:[%s3298_s1 + $0x48] sm:$0xff]  ;;  %v394_v32 = vld [vmem:[%s3297_s2 + $0x10] sm:$0xff] }
   0xc   :  { %1968 = vmatmul.msk.f32.gmra.mxu1 %vm81_vm1, %v57_v14  ;;  %v63_v33 = vld [vmem:[%s3298_s1 + $0x88] sm:$0xff]  ;;  %v64_v35 = vld [vmem:[%s3298_s1 + $0x90] sm:$0xff]  ;;  %v65_v36 = vld [vmem:[%s3298_s1 + $0x98] sm:$0xff] }
   0xd   :  { %415 = vmatpush.msrb.mxu1 %v404_v15  ;;  %1973 = vmatmul.msk.f32.gmra.mxu2 %vm81_vm1, %v62_v17  ;;  %v393_v34 = vld [vmem:[%s3297_s2 + $0x8] sm:$0xff]  ;;  %v66_v37 = vld [vmem:[%s3298_s1 + $0xa0] sm:$0xff]  ;;  %v2406_v38 = vld [vmem:[%s3297_s2 + $0x138] ss:$0 sm:$0xff] }
   0xe   :  { %v2411_v39 = vld [vmem:[%s3297_s2 + $0x13c] ss:$0 sm:$0xff]  ;;  %v67_v42 = vld [vmem:[%s3298_s1 + $0xa8] sm:$0xff]  ;;  %v68_v47 = vld [vmem:[%s3298_s1 + $0xb0] sm:$0xff] }
   0xf   :  { %416 = vmatpush.msrb.mxu1 %v403_v16  ;;  %v69_v52 = vld [vmem:[%s3298_s1 + $0xb8] sm:$0xff]  ;;  %v70_v57 = vld [vmem:[%s3298_s1 + $0xc0] sm:$0xff]  ;;  %v71_v62 = vld [vmem:[%s3298_s1 + $0xc8] sm:$0xff] }
  0x10   :  { %1981 = vmatmul.msk.f32.vlgmr.msra.gmra.mxu3 %vm81_vm1, %v70_v57  ;;  %v74_v11 = vld [vmem:[%s3298_s1 + $0xe0] sm:$0xff]  ;;  %v75_v16 = vld [vmem:[%s3298_s1 + $0xe8] sm:$0xff] }
  0x11   :  { %417 = vmatpush.msrb.mxu1 %v402_v18 }
  0x13   :  { %1959 = vmatmul.msk.f32.gmra.mxu0 %vm81_vm1, %v48_v3  ;;  %418 = vmatpush.msrb.mxu1 %v401_v20  ;;  %v72_v3 = vld [vmem:[%s3298_s1 + $0xd0] sm:$0xff] }
  0x14   :  { %1969 = vmatmul.msk.f32.gmra.mxu1 %vm81_vm1, %v58_v21 }
  0x15   :  { %419 = vmatpush.msrb.mxu1 %v400_v22  ;;  %1974 = vmatmul.msk.f32.gmra.mxu2 %vm81_vm1, %v63_v33  ;;  %v76_v22 = vld [vmem:[%s3298_s1 + $0xf0] sm:$0xff] }
  0x17   :  { %420 = vmatpush.msrb.mxu1 %v399_v23 }
  0x18   :  { %1982 = vmatmul.msk.f32.gmra.mxu3 %vm81_vm1, %v71_v62 }
  0x19   :  { %421 = vmatpush.msrb.mxu1 %v398_v24 }
  0x1b   :  { %1960 = vmatmul.msk.f32.gmra.mxu0 %vm81_vm1, %v49_v4  ;;  %422 = vmatpush.msrb.mxu1 %v397_v26 }
  0x1c   :  { %1970 = vmatmul.msk.f32.gmra.mxu1 %vm81_vm1, %v59_v27 }
  0x1d   :  { %423 = vmatpush.msrb.mxu1 %v396_v28  ;;  %1975 = vmatmul.msk.f32.gmra.mxu2 %vm81_vm1, %v64_v35 }
  0x1f   :  { %424 = vmatpush.msrb.mxu1 %v395_v29  ;;  %v77_v29 = vld [vmem:[%s3298_s1 + $0xf8] sm:$0xff] }
  0x20   :  { %1983 = vmatmul.msk.f32.gmra.mxu3 %vm81_vm1, %v72_v3 }
  0x21   :  { %425 = vmatpush.msrb.mxu1 %v394_v32 }
  0x23   :  { %1961 = vmatmul.msk.f32.gmra.mxu0 %vm81_vm1, %v50_v5  ;;  %426 = vmatpush.msrb.mxu1 %v393_v34 }
  0x24   :  { %1971 = vmatmul.msk.f32.gmra.mxu1 %vm81_vm1, %v60_v31 }
  0x25   :  { %1976 = vmatmul.msk.f32.gmra.mxu2 %vm81_vm1, %v65_v36 }
  0x2b   :  { %1962 = vmatmul.msk.f32.gmra.mxu0 %vm81_vm1, %v51_v6  ;;  %v73_v6 = vld [vmem:[%s3298_s1 + $0xd8] sm:$0xff] }
  0x2c   :  { %1984 = vmatmul.msk.f32.gmra.mxu3 %vm81_vm1, %v73_v6 }
  0x2d   :  { %1977 = vmatmul.msk.f32.gmra.mxu2 %vm81_vm1, %v66_v37 }
  0x33   :  { %1963 = vmatmul.msk.f32.gmra.mxu0 %vm81_vm1, %v52_v12 }
  0x34   :  { %1985 = vmatmul.msk.f32.gmra.mxu3 %vm81_vm1, %v74_v11 }
  0x35   :  { %1978 = vmatmul.msk.f32.gmra.mxu2 %vm81_vm1, %v67_v42 }
  0x3b   :  { %1964 = vmatmul.msk.f32.gmra.mxu0 %vm81_vm1, %v53_v19 }
  0x3c   :  { %1986 = vmatmul.msk.f32.gmra.mxu3 %vm81_vm1, %v75_v16 }
  0x3d   :  { %1979 = vmatmul.msk.f32.gmra.mxu2 %vm81_vm1, %v68_v47 }
  0x43   :  { %1965 = vmatmul.msk.f32.gmra.mxu0 %vm81_vm1, %v54_v25 }
  0x44   :  { %1987 = vmatmul.msk.f32.gmra.mxu3 %vm81_vm1, %v76_v22 }
  0x45   :  { %1980 = vmatmul.msk.f32.gmra.mxu2 %vm81_vm1, %v69_v52 }
  0x4b   :  { %1966 = vmatmul.msk.f32.gmra.mxu0 %vm81_vm1, %v55_v30 }
  0x4c   :  { %1988 = vmatmul.msk.f32.gmra.mxu3 %vm81_vm1, %v77_v29 }
  0x80   :  { %v199_v40 = vpop.f32.mrf.mxu0 }
  0x81   :  { %v200_v41 = vadd.f32 %v2406_v38, %v199_v40  ;;  %v229_v19 = vpop.f32.mrf.mxu1 }
  0x82   :  { %v230_v27 = vadd.f32 %v2406_v38, %v229_v19 }
  0x83   :  { %vm295_vm2 = vcmp.gt.f32.partialorder %v200_v41, 0.0  ;;  %v329_v43 = vmul.f32 %v2411_v39, %v200_v41 }
  0x84   :  { %v339_v30 = vmul.f32 %v2411_v39, %v230_v27  ;;  %vm305_vm12 = vcmp.gt.f32.partialorder %v230_v27, 0.0 }
  0x85   :  { %v361_v44 = vsel %vm295_vm2, %v200_v41, %v329_v43 }
  0x86   :  { %427 = vmatmul.f32.vlgmr.msrb.gmra.mxu1 %v361_v44  ;;  %v371_v32 = vsel %vm305_vm12, %v230_v27, %v339_v30 }
  0x88   :  { %v202_v45 = vpop.f32.mrf.mxu0  ;;  %v244_v41 = vpop.f32.mrf.mxu2 }
  0x89   :  { %v203_v46 = vadd.f32 %v2406_v38, %v202_v45  ;;  %v232_v26 = vpop.f32.mrf.mxu1 }
  0x8a   :  { %v233_v31 = vadd.f32 %v2406_v38, %v232_v26  ;;  %v1169_v26 = vld [vmem:[%s3297_s2 + $0xb0] sm:$0x1f] }
  0x8b   :  { %vm296_vm3 = vcmp.gt.f32.partialorder %v203_v46, 0.0  ;;  %v330_v48 = vmul.f32 %v2411_v39, %v203_v46  ;;  %2021 = vmatpush.msk.msrb.mxu2 %vm178_vm0, %v1169_v26 }
  0x8c   :  { %v340_v34 = vmul.f32 %v2411_v39, %v233_v31  ;;  %vm306_vm13 = vcmp.gt.f32.partialorder %v233_v31, 0.0 }
  0x8d   :  { %v362_v49 = vsel %vm296_vm3, %v203_v46, %v330_v48 }
  0x8e   :  { %430 = vmatmul.f32.gmra.mxu1 %v362_v49  ;;  %v372_v36 = vsel %vm306_vm13, %v233_v31, %v340_v34 }
  0x90   :  { %v205_v50 = vpop.f32.mrf.mxu0  ;;  %v247_v46 = vpop.f32.mrf.mxu2 }
  0x91   :  { %v206_v51 = vadd.f32 %v2406_v38, %v205_v50  ;;  %v235_v33 = vpop.f32.mrf.mxu1  ;;  %v245_v50 = vadd.f32 %v2406_v38, %v244_v41 }
  0x92   :  { %v236_v35 = vadd.f32 %v2406_v38, %v235_v33 }
  0x93   :  { %vm297_vm4 = vcmp.gt.f32.partialorder %v206_v51, 0.0  ;;  %v331_v53 = vmul.f32 %v2411_v39, %v206_v51  ;;  %vm310_vm3 = vcmp.gt.f32.partialorder %v245_v50, 0.0 }
  0x94   :  { %v341_v40 = vmul.f32 %v2411_v39, %v236_v35  ;;  %vm307_vm14 = vcmp.gt.f32.partialorder %v236_v35, 0.0 }
  0x95   :  { %v363_v54 = vsel %vm297_vm4, %v206_v51, %v331_v53  ;;  %v344_v53 = vmul.f32 %v2411_v39, %v245_v50 }
  0x96   :  { %433 = vmatmul.f32.gmra.mxu1 %v363_v54  ;;  %v373_v43 = vsel %vm307_vm14, %v236_v35, %v341_v40  ;;  %v1168_v54 = vld [vmem:[%s3297_s2 + $0xa8] sm:$0xff] }
  0x97   :  { %1554 = vmatpush.msrb.mxu3 %v1168_v54  ;;  %v376_v57 = vsel %vm310_vm3, %v245_v50, %v344_v53 }
  0x98   :  { %v208_v55 = vpop.f32.mrf.mxu0  ;;  %v250_v52 = vpop.f32.mrf.mxu2 }
  0x99   :  { %v209_v56 = vadd.f32 %v2406_v38, %v208_v55  ;;  %v238_v37 = vpop.f32.mrf.mxu1  ;;  %v1167_v55 = vld [vmem:[%s3297_s2 + $0xa0] sm:$0xff] }
  0x9a   :  { %v239_v42 = vadd.f32 %v2406_v38, %v238_v37  ;;  %1555 = vmatpush.msrb.mxu3 %v1167_v55 }
  0x9b   :  { %vm298_vm5 = vcmp.gt.f32.partialorder %v209_v56, 0.0  ;;  %v332_v58 = vmul.f32 %v2411_v39, %v209_v56 }
  0x9c   :  { %v342_v44 = vmul.f32 %v2411_v39, %v239_v42  ;;  %vm308_vm15 = vcmp.gt.f32.partialorder %v239_v42, 0.0 }
  0x9d   :  { %v364_v59 = vsel %vm298_vm5, %v209_v56, %v332_v58  ;;  %v248_v56 = vadd.f32 %v2406_v38, %v247_v46  ;;  %v1166_v58 = vld [vmem:[%s3297_s2 + $0x98] sm:$0xff] }
  0x9e   :  { %436 = vmatmul.f32.gmra.mxu1 %v364_v59  ;;  %v374_v48 = vsel %vm308_vm15, %v239_v42, %v342_v44  ;;  %1556 = vmatpush.msrb.mxu3 %v1166_v58  ;;  %v2502_v59 = vld [vmem:[%s3297_s2 + $0x139] ss:$0 sm:$0xff] }
  0x9f   :  { %v345_v62 = vmul.f32 %v2411_v39, %v248_v56  ;;  %vm311_vm4 = vcmp.gt.f32.partialorder %v248_v56, 0.0 }
  0xa0   :  { %v211_v60 = vpop.f32.mrf.mxu0 }
  0xa1   :  { %v212_v61 = vadd.f32 %v2406_v38, %v211_v60  ;;  %v241_v45 = vpop.f32.mrf.mxu1  ;;  %v253_v60 = vpop.f32.mrf.mxu2  ;;  %v377_v3 = vsel %vm311_vm4, %v248_v56, %v345_v62 }
  0xa2   :  { %v242_v47 = vadd.f32 %v2406_v38, %v241_v45 }
  0xa3   :  { %vm299_vm6 = vcmp.gt.f32.partialorder %v212_v61, 0.0  ;;  %v333_v63 = vmul.f32 %v2411_v39, %v212_v61 }
  0xa4   :  { %v343_v49 = vmul.f32 %v2411_v39, %v242_v47  ;;  %vm309_vm2 = vcmp.gt.f32.partialorder %v242_v47, 0.0 }
  0xa5   :  { %v365_v0 = vsel %vm299_vm6, %v212_v61, %v333_v63  ;;  %v1165_v61 = vld [vmem:[%s3297_s2 + $0x90] sm:$0xff]  ;;  %v1164_v63 = vld [vmem:[%s3297_s2 + $0x88] sm:$0xff] }
  0xa6   :  { %439 = vmatmul.f32.gmra.mxu1 %v365_v0  ;;  %v375_v51 = vsel %vm309_vm2, %v242_v47, %v343_v49  ;;  %1557 = vmatpush.msrb.mxu3 %v1165_v61 }
  0xa8   :  { %v214_v1 = vpop.f32.mrf.mxu0  ;;  %1558 = vmatpush.msrb.mxu3 %v1164_v63 }
  0xa9   :  { %v215_v2 = vadd.f32 %v2406_v38, %v214_v1  ;;  %v256_v6 = vpop.f32.mrf.mxu2 }
  0xab   :  { %vm300_vm7 = vcmp.gt.f32.partialorder %v215_v2, 0.0  ;;  %v334_v4 = vmul.f32 %v2411_v39, %v215_v2 }
  0xad   :  { %v366_v5 = vsel %vm300_vm7, %v215_v2, %v334_v4  ;;  %v251_v2 = vadd.f32 %v2406_v38, %v250_v52 }
  0xae   :  { %442 = vmatmul.f32.gmra.mxu1 %v366_v5 }
  0xaf   :  { %v346_v5 = vmul.f32 %v2411_v39, %v251_v2  ;;  %vm312_vm5 = vcmp.gt.f32.partialorder %v251_v2, 0.0 }
  0xb0   :  { %v217_v7 = vpop.f32.mrf.mxu0 }
  0xb1   :  { %v218_v8 = vadd.f32 %v2406_v38, %v217_v7 }
  0xb3   :  { %vm301_vm8 = vcmp.gt.f32.partialorder %v218_v8, 0.0  ;;  %v335_v9 = vmul.f32 %v2411_v39, %v218_v8 }
  0xb5   :  { %v367_v10 = vsel %vm301_vm8, %v218_v8, %v335_v9  ;;  %v254_v9 = vadd.f32 %v2406_v38, %v253_v60 }
  0xb6   :  { %445 = vmatmul.f32.gmra.mxu1 %v367_v10  ;;  %v378_v10 = vsel %vm312_vm5, %v251_v2, %v346_v5 }
  0xb7   :  { %vm313_vm6 = vcmp.gt.f32.partialorder %v254_v9, 0.0 }
  0xb8   :  { %v220_v12 = vpop.f32.mrf.mxu0 }
  0xb9   :  { %v221_v13 = vadd.f32 %v2406_v38, %v220_v12 }
  0xbb   :  { %vm302_vm9 = vcmp.gt.f32.partialorder %v221_v13, 0.0  ;;  %v336_v14 = vmul.f32 %v2411_v39, %v221_v13 }
  0xbd   :  { %v368_v15 = vsel %vm302_vm9, %v221_v13, %v336_v14  ;;  %v347_v14 = vmul.f32 %v2411_v39, %v254_v9 }
  0xbe   :  { %448 = vmatmul.f32.gmra.mxu1 %v368_v15 }
  0xbf   :  { %v379_v19 = vsel %vm313_vm6, %v254_v9, %v347_v14  ;;  %v2560_v14 = vpop.f32.mrf.mxu3 }
  0xc0   :  { %v223_v17 = vpop.f32.mrf.mxu0 }
  0xc1   :  { %v224_v18 = vadd.f32 %v2406_v38, %v223_v17  ;;  %v259_v17 = vpop.f32.mrf.mxu2 }
  0xc2   :  { %v260_v33 = vadd.f32 %v2406_v38, %v259_v17 }
  0xc3   :  { %vm303_vm10 = vcmp.gt.f32.partialorder %v224_v18, 0.0  ;;  %v337_v20 = vmul.f32 %v2411_v39, %v224_v18 }
  0xc4   :  { %vm315_vm12 = vcmp.gt.f32.partialorder %v260_v33, 0.0 }
  0xc5   :  { %v369_v21 = vsel %vm303_vm10, %v224_v18, %v337_v20  ;;  %v257_v18 = vadd.f32 %v2406_v38, %v256_v6 }
  0xc6   :  { %451 = vmatmul.f32.gmra.mxu1 %v369_v21 }
  0xc7   :  { %vm314_vm7 = vcmp.gt.f32.partialorder %v257_v18, 0.0 }
  0xc8   :  { %v226_v23 = vpop.f32.mrf.mxu0 }
  0xc9   :  { %v227_v24 = vadd.f32 %v2406_v38, %v226_v23  ;;  %v262_v40 = vpop.f32.mrf.mxu2 }
  0xca   :  { %v263_v56 = vadd.f32 %v2406_v38, %v262_v40 }
  0xcb   :  { %vm304_vm11 = vcmp.gt.f32.partialorder %v227_v24, 0.0  ;;  %v338_v25 = vmul.f32 %v2411_v39, %v227_v24 }
  0xcc   :  { %v350_v6 = vmul.f32 %v2411_v39, %v263_v56  ;;  %vm316_vm3 = vcmp.gt.f32.partialorder %v263_v56, 0.0 }
  0xcd   :  { %v370_v28 = vsel %vm304_vm11, %v227_v24, %v338_v25  ;;  %v348_v25 = vmul.f32 %v2411_v39, %v257_v18  ;;  %vm1446_vm11 = vcmask 326656  }
  0xce   :  { %454 = vmatmul.f32.gmra.mxu1 %v370_v28 }
  0xcf   :  { %v380_v34 = vsel %vm314_vm7, %v257_v18, %v348_v25 }
  0xd6   :  { %457 = vmatmul.f32.gmra.mxu1 %v371_v32 }
  0xde   :  { %460 = vmatmul.f32.gmra.mxu1 %v372_v36 }
  0xe6   :  { %463 = vmatmul.f32.gmra.mxu1 %v373_v43  ;;  %v14_v43 = vld [vmem:[%s3299_s0] sm:$0xff] }
  0xee   :  { %466 = vmatmul.f32.gmra.mxu1 %v374_v48  ;;  %v349_v48 = vmul.f32 %v2411_v39, %v260_v33 }
  0xf6   :  { %469 = vmatmul.f32.gmra.mxu1 %v375_v51 }
  0xfe   :  { %472 = vmatmul.f32.gmra.mxu1 %v376_v57  ;;  %v381_v57 = vsel %vm315_vm12, %v260_v33, %v349_v48 }
 0x103   :  { %v428_v0 = vpop.f32.mrf.mxu1 }
 0x104   :  { %v429_v1 = vadd.f32 %v2502_v59, %v428_v0  ;;  %v15_v0 = vld [vmem:[%s3299_s0 + $0x8] sm:$0xff] }
 0x106   :  { %475 = vmatmul.f32.gmra.mxu1 %v377_v3  ;;  %1202 = vrot.lane.b32.xlu0 %v429_v1, %s2243_s17  ;;  %v1989_v4 = vmul.f32 -1.442695, %v429_v1  ;;  %v265_v3 = vpop.f32.mrf.mxu2 }
 0x108   :  { %2112 = vpow2.f32 %v1989_v4 }
 0x10b   :  { %v431_v7 = vpop.f32.mrf.mxu1 }
 0x10c   :  { %v432_v8 = vadd.f32 %v2502_v59, %v431_v7 }
 0x10e   :  { %v2113_v11 = vpop.eup %2112  ;;  %v1990_v12 = vmul.f32 -1.442695, %v432_v8  ;;  %478 = vmatmul.f32.gmra.mxu1 %v378_v10  ;;  %1204 = vrot.lane.b32.xlu0 %v432_v8, %s2243_s17 }
 0x10f   :  { %v620_v13 = vadd.f32 1.0, %v2113_v11 }
 0x110   :  { %2114 = vpow2.f32 %v1990_v12 }
 0x111   :  { %2116 = vrcp.f32 %v620_v13  ;;  %v663_v29 = vand.u32 2147483648, %v620_v13  ;;  %v661_v32 = vand.u32 2147483647, %v620_v13  ;;  %vm657_vm9 = vweird.f32 %v620_v13 }
 0x113   :  { %v434_v15 = vpop.f32.mrf.mxu1  ;;  %v664_v44 = vor.u32 1.1754944e-38, %v663_v29  ;;  %vm662_vm10 = vcmp.eq.f32.partialorder %v661_v32, 8.507059e+37  ;;  %v268_v29 = vpop.f32.mrf.mxu2 }
 0x114   :  { %v435_v16 = vadd.f32 %v2502_v59, %v434_v15  ;;  %v266_v15 = vadd.f32 %v2406_v38, %v265_v3  ;;  %v18_v3 = vld [vmem:[%s3299_s0 + $0x20] sm:$0xff] }
 0x116   :  { %v2115_v20 = vpop.eup %2114  ;;  %481 = vmatmul.f32.gmra.mxu1 %v379_v19  ;;  %1206 = vrot.lane.b32.xlu1 %v435_v16, %s2243_s17  ;;  %v1991_v21 = vmul.f32 -1.442695, %v435_v16  ;;  %v382_v16 = vsel %vm316_vm3, %v263_v56, %v350_v6 }
 0x117   :  { %v2117_v22 = vpop.eup %2116  ;;  %v2522_v23 = vadd.f32 1.0, %v2115_v20 }
 0x118   :  { %v653_v24 = vmul.f32 %v2117_v22, %v620_v13  ;;  %2118 = vpow2.f32 %v1991_v21  ;;  %vm658_vm8 = vweird.f32 %v2117_v22 }
 0x119   :  { %2120 = vrcp.f32 %v2522_v23  ;;  %vm659_vm0 = vmor %vm657_vm9, %vm658_vm8  ;;  %v678_v52 = vand.u32 2147483648, %v2522_v23  ;;  %v676_v55 = vand.u32 2147483647, %v2522_v23  ;;  %vm672_vm14 = vweird.f32 %v2522_v23 }
 0x11a   :  { %v654_v27 = vsub.f32 1.0, %v653_v24  ;;  %vm317_vm8 = vcmp.gt.f32.partialorder %v266_v15, 0.0 }
 0x11b   :  { %v437_v28 = vpop.f32.mrf.mxu1  ;;  %v679_v1 = vor.u32 1.1754944e-38, %v678_v52  ;;  %vm677_vm2 = vcmp.eq.f32.partialorder %v676_v55, 8.507059e+37 }
 0x11c   :  { %v438_v30 = vadd.f32 %v2502_v59, %v437_v28  ;;  %v655_v31 = vmul.f32 %v2117_v22, %v654_v27  ;;  %v351_v27 = vmul.f32 %v2411_v39, %v266_v15 }
 0x11e   :  { %v2119_v35 = vpop.eup %2118  ;;  %v1992_v36 = vmul.f32 -1.442695, %v438_v30  ;;  %484 = vmatmul.f32.gmra.mxu1 %v380_v34  ;;  %1208 = vrot.lane.b32.xlu1 %v438_v30, %s2243_s17  ;;  %v656_v37 = vadd.f32 %v2117_v22, %v655_v31 }
 0x11f   :  { %v2121_v41 = vpop.eup %2120  ;;  %v2533_v42 = vadd.f32 1.0, %v2119_v35 }
 0x120   :  { %2122 = vpow2.f32 %v1992_v36  ;;  %v660_v45 = vsel %vm659_vm0, %v2117_v22, %v656_v37  ;;  %v668_v46 = vmul.f32 %v2121_v41, %v2522_v23  ;;  %vm673_vm13 = vweird.f32 %v2121_v41  ;;  %v16_v22 = vld [vmem:[%s3299_s0 + $0x10] sm:$0xff] }
 0x121   :  { %2124 = vrcp.f32 %v2533_v42  ;;  %v665_v47 = vsel %vm662_vm10, %v664_v44, %v660_v45  ;;  %vm674_vm15 = vmor %vm672_vm14, %vm673_vm13  ;;  %v693_v10 = vand.u32 2147483648, %v2533_v42  ;;  %v691_v13 = vand.u32 2147483647, %v2533_v42 }
 0x122   :  { %v1132_v49 = vmul.f32 %v665_v47, %v14_v43  ;;  %v669_v50 = vsub.f32 1.0, %v668_v46  ;;  %vm687_vm5 = vweird.f32 %v2533_v42  ;;  %v269_v36 = vadd.f32 %v2406_v38, %v268_v29  ;;  %v274_v43 = vpop.f32.mrf.mxu3  ;;  %v17_v46 = vld [vmem:[%s3299_s0 + $0x18] sm:$0xff] }
 0x123   :  { %v440_v51 = vpop.f32.mrf.mxu1  ;;  %v694_v23 = vor.u32 1.1754944e-38, %v693_v10  ;;  %vm692_vm7 = vcmp.eq.f32.partialorder %v691_v13, 8.507059e+37  ;;  %v383_v37 = vsel %vm317_vm8, %v266_v15, %v351_v27 }
 0x124   :  { %2054 = vmatmul.msk.f32.vlgmr.msrb.gmra.mxu3 %vm1446_vm11, %v1132_v49  ;;  %v441_v53 = vadd.f32 %v2502_v59, %v440_v51  ;;  %v670_v54 = vmul.f32 %v2121_v41, %v669_v50  ;;  %v352_v51 = vmul.f32 %v2411_v39, %v269_v36  ;;  %vm318_vm13 = vcmp.gt.f32.partialorder %v269_v36, 0.0 }
 0x126   :  { %v2123_v58 = vpop.eup %2122  ;;  %487 = vmatmul.f32.gmra.mxu1 %v381_v57  ;;  %1210 = vrot.lane.b32.xlu2 %v441_v53, %s2243_s17  ;;  %v1993_v60 = vmul.f32 -1.442695, %v441_v53  ;;  %v671_v61 = vadd.f32 %v2121_v41, %v670_v54 }
 0x127   :  { %v2125_v62 = vpop.eup %2124  ;;  %v2548_v63 = vadd.f32 1.0, %v2123_v58 }
 0x128   :  { %2126 = vpow2.f32 %v1993_v60  ;;  %v675_v2 = vsel %vm674_vm15, %v2121_v41, %v671_v61  ;;  %v683_v4 = vmul.f32 %v2125_v62, %v2533_v42  ;;  %vm688_vm4 = vweird.f32 %v2125_v62 }
 0x129   :  { %2128 = vrcp.f32 %v2548_v63  ;;  %v680_v5 = vsel %vm677_vm2, %v679_v1, %v675_v2  ;;  %vm689_vm6 = vmor %vm687_vm5, %vm688_vm4  ;;  %v708_v32 = vand.u32 2147483648, %v2548_v63  ;;  %v706_v35 = vand.u32 2147483647, %v2548_v63 }
 0x12a   :  { %v1133_v7 = vmul.f32 %v680_v5, %v15_v0  ;;  %v684_v8 = vsub.f32 1.0, %v683_v4  ;;  %vm702_vm0 = vweird.f32 %v2548_v63  ;;  %v272_v60 = vadd.f32 %v2406_v38, %v2560_v14 }
 0x12b   :  { %v443_v9 = vpop.f32.mrf.mxu1  ;;  %v709_v47 = vor.u32 1.1754944e-38, %v708_v32  ;;  %vm707_vm12 = vcmp.eq.f32.partialorder %v706_v35, 8.507059e+37  ;;  %v384_v61 = vsel %vm318_vm13, %v269_v36, %v352_v51 }
 0x12c   :  { %v444_v11 = vadd.f32 %v2502_v59, %v443_v9  ;;  %2055 = vmatmul.msk.f32.gmra.mxu3 %vm1446_vm11, %v1133_v7  ;;  %v685_v12 = vmul.f32 %v2125_v62, %v684_v8  ;;  %v277_v7 = vpop.f32.mrf.mxu3  ;;  %v353_v9 = vmul.f32 %v2411_v39, %v272_v60  ;;  %vm319_vm4 = vcmp.gt.f32.partialorder %v272_v60, 0.0 }
 0x12e   :  { %v2127_v17 = vpop.eup %2126  ;;  %v1994_v18 = vmul.f32 -1.442695, %v444_v11  ;;  %490 = vmatmul.f32.gmra.mxu1 %v382_v16  ;;  %1212 = vrot.lane.b32.xlu2 %v444_v11, %s2243_s17  ;;  %v686_v19 = vadd.f32 %v2125_v62, %v685_v12 }
 0x12f   :  { %v2129_v20 = vpop.eup %2128  ;;  %v2565_v21 = vadd.f32 1.0, %v2127_v17  ;;  %v275_v17 = vadd.f32 %v2406_v38, %v274_v43 }
 0x130   :  { %2130 = vpow2.f32 %v1994_v18  ;;  %v690_v24 = vsel %vm689_vm6, %v2125_v62, %v686_v19  ;;  %v698_v25 = vmul.f32 %v2129_v20, %v2548_v63  ;;  %vm703_vm9 = vweird.f32 %v2129_v20 }
 0x131   :  { %2132 = vrcp.f32 %v2565_v21  ;;  %v695_v26 = vsel %vm692_vm7, %v694_v23, %v690_v24  ;;  %vm704_vm10 = vmor %vm702_vm0, %vm703_vm9  ;;  %v723_v55 = vand.u32 2147483648, %v2565_v21  ;;  %v721_v58 = vand.u32 2147483647, %v2565_v21  ;;  %v19_v24 = vld [vmem:[%s3299_s0 + $0x28] sm:$0xff] }
 0x132   :  { %v1134_v28 = vmul.f32 %v695_v26, %v16_v22  ;;  %v699_v30 = vsub.f32 1.0, %v698_v25  ;;  %vm717_vm15 = vweird.f32 %v2565_v21  ;;  %v385_v18 = vsel %vm319_vm4, %v272_v60, %v353_v9 }
 0x133   :  { %v446_v31 = vpop.f32.mrf.mxu1  ;;  %v724_v4 = vor.u32 1.1754944e-38, %v723_v55  ;;  %vm722_vm3 = vcmp.eq.f32.partialorder %v721_v58, 8.507059e+37  ;;  %v354_v29 = vmul.f32 %v2411_v39, %v275_v17  ;;  %vm320_vm9 = vcmp.gt.f32.partialorder %v275_v17, 0.0 }
 0x134   :  { %v447_v33 = vadd.f32 %v2502_v59, %v446_v31  ;;  %2056 = vmatmul.msk.f32.gmra.mxu3 %vm1446_vm11, %v1134_v28  ;;  %v700_v34 = vmul.f32 %v2129_v20, %v699_v30  ;;  %v280_v32 = vpop.f32.mrf.mxu3 }
 0x136   :  { %v2131_v40 = vpop.eup %2130  ;;  %v1995_v41 = vmul.f32 -1.442695, %v447_v33  ;;  %493 = vmatmul.f32.gmra.mxu1 %v383_v37  ;;  %1214 = vrot.lane.b32.xlu0 %v447_v33, %s2243_s17  ;;  %v701_v42 = vadd.f32 %v2129_v20, %v700_v34 }
 0x137   :  { %v2133_v44 = vpop.eup %2132  ;;  %v2580_v45 = vadd.f32 1.0, %v2131_v40  ;;  %v278_v40 = vadd.f32 %v2406_v38, %v277_v7 }
 0x138   :  { %2134 = vpow2.f32 %v1995_v41  ;;  %v705_v48 = vsel %vm704_vm10, %v2129_v20, %v701_v42  ;;  %v713_v49 = vmul.f32 %v2133_v44, %v2565_v21  ;;  %vm718_vm14 = vweird.f32 %v2133_v44 }
 0x139   :  { %2136 = vrcp.f32 %v2580_v45  ;;  %v710_v50 = vsel %vm707_vm12, %v709_v47, %v705_v48  ;;  %vm719_vm2 = vmor %vm717_vm15, %vm718_vm14  ;;  %v738_v13 = vand.u32 2147483648, %v2580_v45  ;;  %v736_v16 = vand.u32 2147483647, %v2580_v45  ;;  %v20_v47 = vld [vmem:[%s3299_s0 + $0x30] sm:$0xff] }
 0x13a   :  { %v1135_v52 = vmul.f32 %v710_v50, %v17_v46  ;;  %v714_v53 = vsub.f32 1.0, %v713_v49  ;;  %vm732_vm6 = vweird.f32 %v2580_v45  ;;  %v386_v41 = vsel %vm320_vm9, %v275_v17, %v354_v29 }
 0x13b   :  { %v449_v54 = vpop.f32.mrf.mxu1  ;;  %v739_v25 = vor.u32 1.1754944e-38, %v738_v13  ;;  %vm737_vm8 = vcmp.eq.f32.partialorder %v736_v16, 8.507059e+37  ;;  %vm321_vm14 = vcmp.gt.f32.partialorder %v278_v40, 0.0 }
 0x13c   :  { %v450_v56 = vadd.f32 %v2502_v59, %v449_v54  ;;  %2057 = vmatmul.msk.f32.gmra.mxu3 %vm1446_vm11, %v1135_v52  ;;  %v715_v57 = vmul.f32 %v2133_v44, %v714_v53  ;;  %v355_v52 = vmul.f32 %v2411_v39, %v278_v40 }
 0x13e   :  { %v2135_v62 = vpop.eup %2134  ;;  %v1996_v63 = vmul.f32 -1.442695, %v450_v56  ;;  %496 = vmatmul.f32.gmra.mxu1 %v384_v61  ;;  %1216 = vrot.lane.b32.xlu1 %v450_v56, %s2243_s17  ;;  %v716_v0 = vadd.f32 %v2133_v44, %v715_v57  ;;  %v283_v61 = vpop.f32.mrf.mxu3 }
 0x13f   :  { %v2137_v1 = vpop.eup %2136  ;;  %v2596_v2 = vadd.f32 1.0, %v2135_v62  ;;  %v281_v62 = vadd.f32 %v2406_v38, %v280_v32 }
 0x140   :  { %2138 = vpow2.f32 %v1996_v63  ;;  %v720_v5 = vsel %vm719_vm2, %v2133_v44, %v716_v0  ;;  %v728_v6 = vmul.f32 %v2137_v1, %v2580_v45  ;;  %vm733_vm5 = vweird.f32 %v2137_v1 }
 0x141   :  { %2140 = vrcp.f32 %v2596_v2  ;;  %v725_v8 = vsel %vm722_vm3, %v724_v4, %v720_v5  ;;  %vm734_vm7 = vmor %vm732_vm6, %vm733_vm5  ;;  %v753_v34 = vand.u32 2147483648, %v2596_v2  ;;  %v751_v37 = vand.u32 2147483647, %v2596_v2  ;;  %v21_v5 = vld [vmem:[%s3299_s0 + $0x38] sm:$0xff] }
 0x142   :  { %v1136_v10 = vmul.f32 %v725_v8, %v18_v3  ;;  %v729_v11 = vsub.f32 1.0, %v728_v6  ;;  %vm747_vm10 = vweird.f32 %v2596_v2  ;;  %v387_v63 = vsel %vm321_vm14, %v278_v40, %v355_v52 }
 0x143   :  { %v452_v12 = vpop.f32.mrf.mxu1  ;;  %v754_v48 = vor.u32 1.1754944e-38, %v753_v34  ;;  %vm752_vm13 = vcmp.eq.f32.partialorder %v751_v37, 8.507059e+37  ;;  %vm322_vm5 = vcmp.gt.f32.partialorder %v281_v62, 0.0 }
 0x144   :  { %v453_v14 = vadd.f32 %v2502_v59, %v452_v12  ;;  %2058 = vmatmul.msk.f32.gmra.mxu3 %vm1446_vm11, %v1136_v10  ;;  %v730_v15 = vmul.f32 %v2137_v1, %v729_v11  ;;  %v356_v10 = vmul.f32 %v2411_v39, %v281_v62 }
 0x146   :  { %v2139_v19 = vpop.eup %2138  ;;  %v1997_v20 = vmul.f32 -1.442695, %v453_v14  ;;  %499 = vmatmul.f32.gmra.mxu1 %v385_v18  ;;  %1218 = vrot.lane.b32.xlu2 %v453_v14, %s2243_s17  ;;  %v731_v21 = vadd.f32 %v2137_v1, %v730_v15  ;;  %v284_v18 = vadd.f32 %v2406_v38, %v283_v61 }
 0x147   :  { %v2141_v22 = vpop.eup %2140  ;;  %v2611_v23 = vadd.f32 1.0, %v2139_v19  ;;  %v388_v19 = vsel %vm322_vm5, %v281_v62, %v356_v10 }
 0x148   :  { %2142 = vpow2.f32 %v1997_v20  ;;  %v735_v26 = vsel %vm734_vm7, %v2137_v1, %v731_v21  ;;  %v743_v27 = vmul.f32 %v2141_v22, %v2596_v2  ;;  %vm748_vm0 = vweird.f32 %v2141_v22 }
 0x149   :  { %2144 = vrcp.f32 %v2611_v23  ;;  %v740_v28 = vsel %vm737_vm8, %v739_v25, %v735_v26  ;;  %vm749_vm12 = vmor %vm747_vm10, %vm748_vm0  ;;  %v768_v56 = vand.u32 2147483648, %v2611_v23  ;;  %v766_v60 = vand.u32 2147483647, %v2611_v23  ;;  %v22_v26 = vld [vmem:[%s3299_s0 + $0x40] sm:$0xff] }
 0x14a   :  { %v1137_v30 = vmul.f32 %v740_v28, %v19_v24  ;;  %v744_v31 = vsub.f32 1.0, %v743_v27  ;;  %vm762_vm2 = vweird.f32 %v2611_v23  ;;  %vm323_vm0 = vcmp.gt.f32.partialorder %v284_v18, 0.0 }
 0x14b   :  { %v455_v33 = vpop.f32.mrf.mxu1  ;;  %v769_v6 = vor.u32 1.1754944e-38, %v768_v56  ;;  %vm767_vm4 = vcmp.eq.f32.partialorder %v766_v60, 8.507059e+37 }
 0x14c   :  { %v456_v35 = vadd.f32 %v2502_v59, %v455_v33  ;;  %2059 = vmatmul.msk.f32.gmra.mxu3 %vm1446_vm11, %v1137_v30  ;;  %v745_v36 = vmul.f32 %v2141_v22, %v744_v31  ;;  %v357_v31 = vmul.f32 %v2411_v39, %v284_v18 }
 0x14e   :  { %v2143_v42 = vpop.eup %2142  ;;  %v1998_v43 = vmul.f32 -1.442695, %v456_v35  ;;  %502 = vmatmul.f32.gmra.mxu1 %v386_v41  ;;  %1220 = vrot.lane.b32.xlu0 %v456_v35, %s2243_s17  ;;  %v746_v44 = vadd.f32 %v2141_v22, %v745_v36 }
 0x14f   :  { %v2145_v45 = vpop.eup %2144  ;;  %v2626_v46 = vadd.f32 1.0, %v2143_v42  ;;  %v389_v42 = vsel %vm323_vm0, %v284_v18, %v357_v31 }
 0x150   :  { %2146 = vpow2.f32 %v1998_v43  ;;  %v750_v49 = vsel %vm749_vm12, %v2141_v22, %v746_v44  ;;  %v758_v50 = vmul.f32 %v2145_v45, %v2611_v23  ;;  %vm763_vm15 = vweird.f32 %v2145_v45  ;;  %v286_v23 = vpop.f32.mrf.mxu3 }
 0x151   :  { %2148 = vrcp.f32 %v2626_v46  ;;  %v755_v51 = vsel %vm752_vm13, %v754_v48, %v750_v49  ;;  %vm764_vm3 = vmor %vm762_vm2, %vm763_vm15  ;;  %v783_v14 = vand.u32 2147483648, %v2626_v46  ;;  %v781_v17 = vand.u32 2147483647, %v2626_v46  ;;  %v23_v48 = vld [vmem:[%s3299_s0 + $0x48] sm:$0xff] }
 0x152   :  { %v1138_v53 = vmul.f32 %v755_v51, %v20_v47  ;;  %v759_v54 = vsub.f32 1.0, %v758_v50  ;;  %vm777_vm7 = vweird.f32 %v2626_v46  ;;  %v287_v41 = vadd.f32 %v2406_v38, %v286_v23 }
 0x153   :  { %v458_v55 = vpop.f32.mrf.mxu1  ;;  %v784_v27 = vor.u32 1.1754944e-38, %v783_v14  ;;  %vm782_vm9 = vcmp.eq.f32.partialorder %v781_v17, 8.507059e+37 }
 0x154   :  { %v459_v57 = vadd.f32 %v2502_v59, %v458_v55  ;;  %2060 = vmatmul.msk.f32.gmra.mxu3 %vm1446_vm11, %v1138_v53  ;;  %v760_v58 = vmul.f32 %v2145_v45, %v759_v54  ;;  %v358_v54 = vmul.f32 %v2411_v39, %v287_v41  ;;  %vm324_vm15 = vcmp.gt.f32.partialorder %v287_v41, 0.0 }
 0x156   :  { %v2147_v0 = vpop.eup %2146  ;;  %v1999_v1 = vmul.f32 -1.442695, %v459_v57  ;;  %505 = vmatmul.f32.gmra.mxu1 %v387_v63  ;;  %1222 = vrot.lane.b32.xlu1 %v459_v57, %s2243_s17  ;;  %v761_v2 = vadd.f32 %v2145_v45, %v760_v58 }
 0x157   :  { %v2149_v3 = vpop.eup %2148  ;;  %v2641_v4 = vadd.f32 1.0, %v2147_v0  ;;  %v390_v0 = vsel %vm324_vm15, %v287_v41, %v358_v54 }
 0x158   :  { %2150 = vpow2.f32 %v1999_v1  ;;  %v765_v7 = vsel %vm764_vm3, %v2145_v45, %v761_v2  ;;  %v773_v8 = vmul.f32 %v2149_v3, %v2626_v46  ;;  %vm778_vm6 = vweird.f32 %v2149_v3  ;;  %v289_v51 = vpop.f32.mrf.mxu3 }
 0x159   :  { %2152 = vrcp.f32 %v2641_v4  ;;  %v770_v9 = vsel %vm767_vm4, %v769_v6, %v765_v7  ;;  %vm779_vm8 = vmor %vm777_vm7, %vm778_vm6  ;;  %v798_v35 = vand.u32 2147483648, %v2641_v4  ;;  %v796_v40 = vand.u32 2147483647, %v2641_v4 }
 0x15a   :  { %v1139_v11 = vmul.f32 %v770_v9, %v21_v5  ;;  %v774_v12 = vsub.f32 1.0, %v773_v8  ;;  %vm792_vm12 = vweird.f32 %v2641_v4  ;;  %v290_v63 = vadd.f32 %v2406_v38, %v289_v51  ;;  %v24_v5 = vld [vmem:[%s3299_s0 + $0x50] sm:$0xff]  ;;  %v2240_v9 = vld [vmem:[%s3297_s2 + $0x13c] ss:$0 sm:$0xff] }
 0x15b   :  { %v461_v13 = vpop.f32.mrf.mxu1  ;;  %v799_v49 = vor.u32 1.1754944e-38, %v798_v35  ;;  %vm797_vm14 = vcmp.eq.f32.partialorder %v796_v40, 8.507059e+37 }
 0x15c   :  { %v462_v15 = vadd.f32 %v2502_v59, %v461_v13  ;;  %2061 = vmatmul.msk.f32.gmra.mxu3 %vm1446_vm11, %v1139_v11  ;;  %v775_v16 = vmul.f32 %v2149_v3, %v774_v12  ;;  %v359_v10 = vmul.f32 %v2240_v9, %v290_v63  ;;  %vm325_vm6 = vcmp.gt.f32.partialorder %v290_v63, 0.0 }
 0x15e   :  { %v2151_v20 = vpop.eup %2150  ;;  %v2000_v21 = vmul.f32 -1.442695, %v462_v15  ;;  %508 = vmatmul.f32.gmra.mxu1 %v388_v19  ;;  %1224 = vrot.lane.b32.xlu2 %v462_v15, %s2243_s17  ;;  %v776_v22 = vadd.f32 %v2149_v3, %v775_v16  ;;  %v2241_v19 = vld [vmem:[%s3297_s2 + $0x138] ss:$0 sm:$0xff] }
 0x15f   :  { %v2153_v24 = vpop.eup %2152  ;;  %v2656_v25 = vadd.f32 1.0, %v2151_v20 }
 0x160   :  { %2154 = vpow2.f32 %v2000_v21  ;;  %v780_v28 = vsel %vm779_vm8, %v2149_v3, %v776_v22  ;;  %v788_v29 = vmul.f32 %v2153_v24, %v2641_v4  ;;  %vm793_vm10 = vweird.f32 %v2153_v24  ;;  %v292_v12 = vpop.f32.mrf.mxu3 }
 0x161   :  { %2156 = vrcp.f32 %v2656_v25  ;;  %v785_v30 = vsel %vm782_vm9, %v784_v27, %v780_v28  ;;  %vm794_vm13 = vmor %vm792_vm12, %vm793_vm10  ;;  %v813_v58 = vand.u32 2147483648, %v2656_v25  ;;  %v811_v62 = vand.u32 2147483647, %v2656_v25  ;;  %v25_v27 = vld [vmem:[%s3299_s0 + $0x58] sm:$0xff] }
 0x162   :  { %v1140_v32 = vmul.f32 %v785_v30, %v22_v26  ;;  %v789_v33 = vsub.f32 1.0, %v788_v29  ;;  %vm807_vm3 = vweird.f32 %v2656_v25  ;;  %v293_v20 = vadd.f32 %v2241_v19, %v292_v12 }
 0x163   :  { %v464_v34 = vpop.f32.mrf.mxu1  ;;  %v814_v6 = vor.u32 1.1754944e-38, %v813_v58  ;;  %vm812_vm5 = vcmp.eq.f32.partialorder %v811_v62, 8.507059e+37  ;;  %v391_v21 = vsel %vm325_vm6, %v290_v63, %v359_v10 }
 0x164   :  { %v465_v36 = vadd.f32 %v2502_v59, %v464_v34  ;;  %2062 = vmatmul.msk.f32.gmra.mxu3 %vm1446_vm11, %v1140_v32  ;;  %v790_v37 = vmul.f32 %v2153_v24, %v789_v33  ;;  %v360_v33 = vmul.f32 %v2240_v9, %v293_v20  ;;  %vm326_vm10 = vcmp.gt.f32.partialorder %v293_v20, 0.0 }
 0x166   :  { %v2155_v43 = vpop.eup %2154  ;;  %v2001_v44 = vmul.f32 -1.442695, %v465_v36  ;;  %511 = vmatmul.f32.gmra.mxu1 %v389_v42  ;;  %1226 = vrot.lane.b32.xlu0 %v465_v36, %s2243_s17  ;;  %v791_v45 = vadd.f32 %v2153_v24, %v790_v37 }
 0x167   :  { %v2157_v46 = vpop.eup %2156  ;;  %v2671_v47 = vadd.f32 1.0, %v2155_v43  ;;  %v392_v43 = vsel %vm326_vm10, %v293_v20, %v360_v33  ;;  %v28_v20 = vld [vmem:[%s3299_s0 + $0x70] sm:$0xff] }
 0x168   :  { %2158 = vpow2.f32 %v2001_v44  ;;  %v795_v50 = vsel %vm794_vm13, %v2153_v24, %v791_v45  ;;  %v803_v52 = vmul.f32 %v2157_v46, %v2656_v25  ;;  %vm808_vm2 = vweird.f32 %v2157_v46 }
 0x169   :  { %2160 = vrcp.f32 %v2671_v47  ;;  %v800_v53 = vsel %vm797_vm14, %v799_v49, %v795_v50  ;;  %vm809_vm4 = vmor %vm807_vm3, %vm808_vm2  ;;  %v828_v15 = vand.u32 2147483648, %v2671_v47  ;;  %v826_v18 = vand.u32 2147483647, %v2671_v47  ;;  %v26_v49 = vld [vmem:[%s3299_s0 + $0x60] sm:$0xff] }
 0x16a   :  { %v1141_v55 = vmul.f32 %v800_v53, %v23_v48  ;;  %v804_v56 = vsub.f32 1.0, %v803_v52  ;;  %vm822_vm8 = vweird.f32 %v2671_v47 }
 0x16b   :  { %v467_v57 = vpop.f32.mrf.mxu1  ;;  %v829_v28 = vor.u32 1.1754944e-38, %v828_v15  ;;  %vm827_vm0 = vcmp.eq.f32.partialorder %v826_v18, 8.507059e+37 }
 0x16c   :  { %v468_v60 = vadd.f32 %v2502_v59, %v467_v57  ;;  %2063 = vmatmul.msk.f32.gmra.mxu3 %vm1446_vm11, %v1141_v55  ;;  %v805_v61 = vmul.f32 %v2157_v46, %v804_v56 }
 0x16e   :  { %v2159_v1 = vpop.eup %2158  ;;  %v2002_v2 = vmul.f32 -1.442695, %v468_v60  ;;  %514 = vmatmul.f32.gmra.mxu1 %v390_v0  ;;  %1228 = vrot.lane.b32.xlu1 %v468_v60, %s2243_s17  ;;  %v806_v39 = vadd.f32 %v2157_v46, %v805_v61 }
 0x16f   :  { %v2161_v3 = vpop.eup %2160  ;;  %v2686_v4 = vadd.f32 1.0, %v2159_v1 }
 0x170   :  { %2162 = vpow2.f32 %v2002_v2  ;;  %v810_v38 = vsel %vm809_vm4, %v2157_v46, %v806_v39  ;;  %v818_v7 = vmul.f32 %v2161_v3, %v2671_v47  ;;  %vm823_vm7 = vweird.f32 %v2161_v3 }
 0x171   :  { %2164 = vrcp.f32 %v2686_v4  ;;  %v815_v8 = vsel %vm812_vm5, %v814_v6, %v810_v38  ;;  %vm824_vm9 = vmor %vm822_vm8, %vm823_vm7  ;;  %v843_v37 = vand.u32 2147483648, %v2686_v4  ;;  %v841_v42 = vand.u32 2147483647, %v2686_v4 }
 0x172   :  { %v1142_v11 = vmul.f32 %v815_v8, %v24_v5  ;;  %v819_v13 = vsub.f32 1.0, %v818_v7  ;;  %vm837_vm13 = vweird.f32 %v2686_v4 }
 0x173   :  { %v470_v14 = vpop.f32.mrf.mxu1  ;;  %v844_v50 = vor.u32 1.1754944e-38, %v843_v37  ;;  %vm842_vm15 = vcmp.eq.f32.partialorder %v841_v42, 8.507059e+37 }
 0x174   :  { %v471_v16 = vadd.f32 %v2502_v59, %v470_v14  ;;  %2064 = vmatmul.msk.f32.gmra.mxu3 %vm1446_vm11, %v1142_v11  ;;  %v820_v17 = vmul.f32 %v2161_v3, %v819_v13 }
 0x176   :  { %v2163_v22 = vpop.eup %2162  ;;  %v2003_v23 = vmul.f32 -1.442695, %v471_v16  ;;  %517 = vmatmul.f32.gmra.mxu1 %v391_v21  ;;  %1230 = vrot.lane.b32.xlu2 %v471_v16, %s2243_s17  ;;  %v821_v24 = vadd.f32 %v2161_v3, %v820_v17 }
 0x177   :  { %v2165_v25 = vpop.eup %2164  ;;  %v2705_v26 = vadd.f32 1.0, %v2163_v22 }
 0x178   :  { %2166 = vpow2.f32 %v2003_v23  ;;  %v1203_v29 = vpop.permute.xlu0 %1202  ;;  %v825_v30 = vsel %vm824_vm9, %v2161_v3, %v821_v24  ;;  %v833_v31 = vmul.f32 %v2165_v25, %v2686_v4  ;;  %vm838_vm12 = vweird.f32 %v2165_v25  ;;  %v27_v3 = vld [vmem:[%s3299_s0 + $0x68] sm:$0xff] }
 0x179   :  { %2168 = vrcp.f32 %v2705_v26  ;;  %2022 = vmatmul.msk.f32.vlgmr.msrb.gmra.mxu2 %vm81_vm1, %v1203_v29  ;;  %v830_v32 = vsel %vm827_vm0, %v829_v28, %v825_v30  ;;  %vm839_vm14 = vmor %vm837_vm13, %vm838_vm12  ;;  %v858_v58 = vand.u32 2147483648, %v2705_v26  ;;  %v856_v62 = vand.u32 2147483647, %v2705_v26 }
 0x17a   :  { %v1143_v34 = vmul.f32 %v830_v32, %v25_v27  ;;  %v834_v35 = vsub.f32 1.0, %v833_v31  ;;  %vm852_vm3 = vweird.f32 %v2705_v26 }
 0x17b   :  { %v473_v36 = vpop.f32.mrf.mxu1  ;;  %v859_v4 = vor.u32 1.1754944e-38, %v858_v58  ;;  %vm857_vm5 = vcmp.eq.f32.partialorder %v856_v62, 8.507059e+37  ;;  %v30_v58 = vld [vmem:[%s3299_s0 + $0x80] sm:$0xff] }
 0x17c   :  { %v474_v40 = vadd.f32 %v2502_v59, %v473_v36  ;;  %2065 = vmatmul.msk.f32.gmra.mxu3 %vm1446_vm11, %v1143_v34  ;;  %v835_v41 = vmul.f32 %v2165_v25, %v834_v35 }
 0x17e   :  { %v2167_v44 = vpop.eup %2166  ;;  %v2004_v45 = vmul.f32 -1.442695, %v474_v40  ;;  %520 = vmatmul.f32.gmra.mxu1 %v392_v43  ;;  %1232 = vrot.lane.b32.xlu0 %v474_v40, %s2243_s17  ;;  %v836_v46 = vadd.f32 %v2165_v25, %v835_v41 }
 0x17f   :  { %v2169_v47 = vpop.eup %2168  ;;  %v634_v48 = vadd.f32 1.0, %v2167_v44 }
 0x180   :  { %2170 = vpow2.f32 %v2004_v45  ;;  %v1205_v51 = vpop.permute.xlu0 %1204  ;;  %v840_v52 = vsel %vm839_vm14, %v2165_v25, %v836_v46  ;;  %v848_v53 = vmul.f32 %v2169_v47, %v2705_v26  ;;  %vm853_vm2 = vweird.f32 %v2169_v47  ;;  %v1211_v34 = vpop.permute.xlu2 %1210 }
 0x181   :  { %2172 = vrcp.f32 %v634_v48  ;;  %2023 = vmatmul.msk.f32.gmra.mxu2 %vm81_vm1, %v1205_v51  ;;  %v845_v54 = vsel %vm842_vm15, %v844_v50, %v840_v52  ;;  %vm854_vm4 = vmor %vm852_vm3, %vm853_vm2  ;;  %v873_v11 = vand.u32 2147483648, %v634_v48  ;;  %v871_v14 = vand.u32 2147483647, %v634_v48 }
 0x182   :  { %v1144_v55 = vmul.f32 %v845_v54, %v26_v49  ;;  %v849_v56 = vsub.f32 1.0, %v848_v53  ;;  %vm867_vm7 = vweird.f32 %v634_v48  ;;  %v2766_v49 = vld [vmem:[%s3297_s2 + $0x139] ss:$0 sm:$0xff] }
 0x183   :  { %v476_v57 = vpop.f32.mrf.mxu1  ;;  %v874_v21 = vor.u32 1.1754944e-38, %v873_v11  ;;  %vm872_vm9 = vcmp.eq.f32.partialorder %v871_v14, 8.507059e+37  ;;  %v31_v11 = vld [vmem:[%s3299_s0 + $0x88] sm:$0xff] }
 0x184   :  { %v477_v60 = vadd.f32 %v2502_v59, %v476_v57  ;;  %2066 = vmatmul.msk.f32.gmra.mxu3 %vm1446_vm11, %v1144_v55  ;;  %v850_v61 = vmul.f32 %v2169_v47, %v849_v56 }
 0x186   :  { %v2171_v63 = vpop.eup %2170  ;;  %v2005_v0 = vmul.f32 -1.442695, %v477_v60  ;;  %1234 = vrot.lane.b32.xlu1 %v477_v60, %s2243_s17  ;;  %v851_v1 = vadd.f32 %v2169_v47, %v850_v61 }
 0x187   :  { %v2173_v2 = vpop.eup %2172  ;;  %v2730_v39 = vadd.f32 1.0, %v2171_v63 }
 0x188   :  { %2174 = vpow2.f32 %v2005_v0  ;;  %v1207_v5 = vpop.permute.xlu1 %1206  ;;  %v855_v6 = vsel %vm854_vm4, %v2169_v47, %v851_v1  ;;  %v863_v38 = vmul.f32 %v2173_v2, %v634_v48  ;;  %vm868_vm6 = vweird.f32 %v2173_v2  ;;  %v1213_v61 = vpop.permute.xlu2 %1212 }
 0x189   :  { %2176 = vrcp.f32 %v2730_v39  ;;  %2024 = vmatmul.msk.f32.gmra.mxu2 %vm81_vm1, %v1207_v5  ;;  %v860_v7 = vsel %vm857_vm5, %v859_v4, %v855_v6  ;;  %vm869_vm8 = vmor %vm867_vm7, %vm868_vm6  ;;  %v888_v29 = vand.u32 2147483648, %v2730_v39  ;;  %v886_v32 = vand.u32 2147483647, %v2730_v39 }
 0x18a   :  { %v1145_v8 = vmul.f32 %v860_v7, %v27_v3  ;;  %v864_v9 = vsub.f32 1.0, %v863_v38  ;;  %vm882_vm10 = vweird.f32 %v2730_v39 }
 0x18b   :  { %v479_v10 = vpop.f32.mrf.mxu1  ;;  %v889_v41 = vor.u32 1.1754944e-38, %v888_v29  ;;  %vm887_vm13 = vcmp.eq.f32.partialorder %v886_v32, 8.507059e+37  ;;  %v32_v29 = vld [vmem:[%s3299_s0 + $0x90] sm:$0xff] }
 0x18c   :  { %v480_v12 = vadd.f32 %v2502_v59, %v479_v10  ;;  %2067 = vmatmul.msk.f32.gmra.mxu3 %vm1446_vm11, %v1145_v8  ;;  %v865_v13 = vmul.f32 %v2173_v2, %v864_v9 }
 0x18e   :  { %v2175_v15 = vpop.eup %2174  ;;  %v2006_v16 = vmul.f32 -1.442695, %v480_v12  ;;  %1236 = vrot.lane.b32.xlu2 %v480_v12, %s2243_s17  ;;  %v866_v17 = vadd.f32 %v2173_v2, %v865_v13 }
 0x18f   :  { %v2177_v18 = vpop.eup %2176  ;;  %v2740_v19 = vadd.f32 1.0, %v2175_v15 }
 0x190   :  { %2178 = vpow2.f32 %v2006_v16  ;;  %v1209_v22 = vpop.permute.xlu1 %1208  ;;  %v870_v23 = vsel %vm869_vm8, %v2173_v2, %v866_v17  ;;  %v878_v24 = vmul.f32 %v2177_v18, %v2730_v39  ;;  %vm883_vm0 = vweird.f32 %v2177_v18 }
 0x191   :  { %2180 = vrcp.f32 %v2740_v19  ;;  %2025 = vmatmul.msk.f32.gmra.mxu2 %vm81_vm1, %v1209_v22  ;;  %v875_v25 = vsel %vm872_vm9, %v874_v21, %v870_v23  ;;  %vm884_vm12 = vmor %vm882_vm10, %vm883_vm0  ;;  %v903_v48 = vand.u32 2147483648, %v2740_v19  ;;  %v901_v52 = vand.u32 2147483647, %v2740_v19 }
 0x192   :  { %v1146_v26 = vmul.f32 %v875_v25, %v28_v20  ;;  %v879_v27 = vsub.f32 1.0, %v878_v24  ;;  %vm897_vm15 = vweird.f32 %v2740_v19 }
 0x193   :  { %v482_v28 = vpop.f32.mrf.mxu1  ;;  %v904_v60 = vor.u32 1.1754944e-38, %v903_v48  ;;  %vm902_vm3 = vcmp.eq.f32.partialorder %v901_v52, 8.507059e+37  ;;  %v33_v48 = vld [vmem:[%s3299_s0 + $0x98] sm:$0xff] }
 0x194   :  { %v483_v30 = vadd.f32 %v2502_v59, %v482_v28  ;;  %2068 = vmatmul.msk.f32.gmra.mxu3 %vm1446_vm11, %v1146_v26  ;;  %v880_v31 = vmul.f32 %v2177_v18, %v879_v27  ;;  %v29_v59 = vld [vmem:[%s3299_s0 + $0x78] sm:$0xff] }
 0x196   :  { %v2179_v33 = vpop.eup %2178  ;;  %v2007_v35 = vmul.f32 -1.442695, %v483_v30  ;;  %1238 = vrot.lane.b32.xlu0 %v483_v30, %s2243_s17  ;;  %v881_v36 = vadd.f32 %v2177_v18, %v880_v31 }
 0x197   :  { %v2181_v37 = vpop.eup %2180  ;;  %v2754_v40 = vadd.f32 1.0, %v2179_v33 }
 0x198   :  { %v893_v42 = vmul.f32 %v2181_v37, %v2740_v19  ;;  %2182 = vpow2.f32 %v2007_v35  ;;  %v885_v43 = vsel %vm884_vm12, %v2177_v18, %v881_v36  ;;  %vm898_vm14 = vweird.f32 %v2181_v37 }
 0x199   :  { %2184 = vrcp.f32 %v2754_v40  ;;  %2026 = vmatmul.msk.f32.gmra.mxu2 %vm81_vm1, %v1211_v34  ;;  %v890_v44 = vsel %vm887_vm13, %v889_v41, %v885_v43  ;;  %vm899_vm2 = vmor %vm897_vm15, %vm898_vm14  ;;  %v918_v3 = vand.u32 2147483648, %v2754_v40  ;;  %v916_v6 = vand.u32 2147483647, %v2754_v40 }
 0x19a   :  { %v894_v45 = vsub.f32 1.0, %v893_v42  ;;  %v1147_v46 = vmul.f32 %v890_v44, %v29_v59  ;;  %vm912_vm5 = vweird.f32 %v2754_v40 }
 0x19b   :  { %v485_v47 = vpop.f32.mrf.mxu1  ;;  %v919_v12 = vor.u32 1.1754944e-38, %v918_v3  ;;  %vm917_vm7 = vcmp.eq.f32.partialorder %v916_v6, 8.507059e+37  ;;  %v34_v6 = vld [vmem:[%s3299_s0 + $0xa0] sm:$0xff] }
 0x19c   :  { %v486_v50 = vadd.f32 %v2766_v49, %v485_v47  ;;  %2069 = vmatmul.msk.f32.gmra.mxu3 %vm1446_vm11, %v1147_v46  ;;  %v895_v51 = vmul.f32 %v2181_v37, %v894_v45 }
 0x19e   :  { %v2183_v53 = vpop.eup %2182  ;;  %v2008_v54 = vmul.f32 -1.442695, %v486_v50  ;;  %1240 = vrot.lane.b32.xlu1 %v486_v50, %s2243_s17  ;;  %v896_v55 = vadd.f32 %v2181_v37, %v895_v51 }
 0x19f   :  { %v2185_v56 = vpop.eup %2184  ;;  %v2773_v57 = vadd.f32 1.0, %v2183_v53 }
 0x1a0   :  { %v908_v62 = vmul.f32 %v2185_v56, %v2754_v40  ;;  %2186 = vpow2.f32 %v2008_v54  ;;  %v900_v63 = vsel %vm899_vm2, %v2181_v37, %v896_v55  ;;  %vm913_vm4 = vweird.f32 %v2185_v56  ;;  %v1219_v51 = vpop.permute.xlu2 %1218 }
 0x1a1   :  { %2188 = vrcp.f32 %v2773_v57  ;;  %2027 = vmatmul.msk.f32.gmra.mxu2 %vm81_vm1, %v1213_v61  ;;  %v905_v0 = vsel %vm902_vm3, %v904_v60, %v900_v63  ;;  %vm914_vm6 = vmor %vm912_vm5, %vm913_vm4  ;;  %v933_v20 = vand.u32 2147483648, %v2773_v57  ;;  %v931_v23 = vand.u32 2147483647, %v2773_v57 }
 0x1a2   :  { %v909_v1 = vsub.f32 1.0, %v908_v62  ;;  %v1148_v2 = vmul.f32 %v905_v0, %v30_v58  ;;  %vm927_vm9 = vweird.f32 %v2773_v57  ;;  %v1802_v58 = vld [vmem:[%s3297_s2 + $0x128] sm:$0xff] }
 0x1a3   :  { %v488_v39 = vpop.f32.mrf.mxu1  ;;  %v934_v30 = vor.u32 1.1754944e-38, %v933_v20  ;;  %vm932_vm10 = vcmp.eq.f32.partialorder %v931_v23, 8.507059e+37 }
 0x1a4   :  { %v489_v4 = vadd.f32 %v2766_v49, %v488_v39  ;;  %2070 = vmatmul.msk.f32.gmra.mxu3 %vm1446_vm11, %v1148_v2  ;;  %v910_v5 = vmul.f32 %v2185_v56, %v909_v1 }
 0x1a6   :  { %v2187_v38 = vpop.eup %2186  ;;  %v2009_v7 = vmul.f32 -1.442695, %v489_v4  ;;  %1242 = vrot.lane.b32.xlu2 %v489_v4, %s2243_s17  ;;  %v911_v8 = vadd.f32 %v2185_v56, %v910_v5 }
 0x1a7   :  { %v2189_v9 = vpop.eup %2188  ;;  %v2787_v10 = vadd.f32 1.0, %v2187_v38  ;;  %v2833_v2 = vpop.f32.mrf.mxu3 }
 0x1a8   :  { %v923_v13 = vmul.f32 %v2189_v9, %v2773_v57  ;;  %2190 = vpow2.f32 %v2009_v7  ;;  %v1215_v14 = vpop.permute.xlu0 %1214  ;;  %v915_v15 = vsel %vm914_vm6, %v2185_v56, %v911_v8  ;;  %vm928_vm8 = vweird.f32 %v2189_v9  ;;  %v1803_v57 = vld [vmem:[%s3297_s2 + $0x130] sm:$0xff] }
 0x1a9   :  { %2192 = vrcp.f32 %v2787_v10  ;;  %2028 = vmatmul.msk.f32.gmra.mxu2 %vm81_vm1, %v1215_v14  ;;  %v920_v16 = vsel %vm917_vm7, %v919_v12, %v915_v15  ;;  %vm929_vm0 = vmor %vm927_vm9, %vm928_vm8  ;;  %v948_v40 = vand.u32 2147483648, %v2787_v10  ;;  %v946_v42 = vand.u32 2147483647, %v2787_v10  ;;  %1806 = vmatpush.msrb.mxu0 %v1803_v57 }
 0x1aa   :  { %v924_v17 = vsub.f32 1.0, %v923_v13  ;;  %v1149_v18 = vmul.f32 %v920_v16, %v31_v11  ;;  %vm942_vm13 = vweird.f32 %v2787_v10  ;;  %2089 = vmatpush.msra.mxu1 %v1803_v57  ;;  %v1801_v13 = vld [vmem:[%s3297_s2 + $0x120] sm:$0xff] }
 0x1ab   :  { %v491_v19 = vpop.f32.mrf.mxu1  ;;  %v949_v50 = vor.u32 1.1754944e-38, %v948_v40  ;;  %vm947_vm15 = vcmp.eq.f32.partialorder %v946_v42, 8.507059e+37  ;;  %1807 = vmatpush.msrb.mxu0 %v1802_v58 }
 0x1ac   :  { %v492_v21 = vadd.f32 %v2766_v49, %v491_v19  ;;  %2071 = vmatmul.msk.f32.gmra.mxu3 %vm1446_vm11, %v1149_v18  ;;  %v925_v22 = vmul.f32 %v2189_v9, %v924_v17  ;;  %2090 = vmatpush.msra.mxu1 %v1802_v58 }
 0x1ad   :  { %1808 = vmatpush.msrb.mxu0 %v1801_v13 }
 0x1ae   :  { %v2191_v24 = vpop.eup %2190  ;;  %v2010_v25 = vmul.f32 -1.442695, %v492_v21  ;;  %1244 = vrot.lane.b32.xlu0 %v492_v21, %s2243_s17  ;;  %v926_v26 = vadd.f32 %v2189_v9, %v925_v22  ;;  %2091 = vmatpush.msra.mxu1 %v1801_v13  ;;  %v1793_v13 = vld [vmem:[%s3297_s2 + $0xe0] sm:$0xff] }
 0x1af   :  { %v2193_v27 = vpop.eup %2192  ;;  %v2801_v28 = vadd.f32 1.0, %v2191_v24  ;;  %v35_v24 = vld [vmem:[%s3299_s0 + $0xa8] sm:$0xff] }
 0x1b0   :  { %v938_v31 = vmul.f32 %v2193_v27, %v2787_v10  ;;  %2194 = vpow2.f32 %v2010_v25  ;;  %v1217_v32 = vpop.permute.xlu1 %1216  ;;  %v930_v33 = vsel %vm929_vm0, %v2189_v9, %v926_v26  ;;  %vm943_vm12 = vweird.f32 %v2193_v27  ;;  %v2859_v26 = vpop.f32.mrf.mxu3 }
 0x1b1   :  { %2196 = vrcp.f32 %v2801_v28  ;;  %2029 = vmatmul.msk.f32.gmra.mxu2 %vm81_vm1, %v1217_v32  ;;  %v935_v34 = vsel %vm932_vm10, %v934_v30, %v930_v33  ;;  %vm944_vm14 = vmor %vm942_vm13, %vm943_vm12  ;;  %v963_v61 = vand.u32 2147483648, %v2801_v28  ;;  %v961_v0 = vand.u32 2147483647, %v2801_v28  ;;  %v1800_v33 = vld [vmem:[%s3297_s2 + $0x118] sm:$0xff] }
 0x1b2   :  { %v939_v35 = vsub.f32 1.0, %v938_v31  ;;  %v1150_v36 = vmul.f32 %v935_v34, %v32_v29  ;;  %vm957_vm3 = vweird.f32 %v2801_v28  ;;  %v1799_v34 = vld [vmem:[%s3297_s2 + $0x110] sm:$0xff]  ;;  %1809 = vmatpush.msrb.mxu0 %v1800_v33  ;;  %2092 = vmatpush.msra.mxu1 %v1800_v33 }
 0x1b3   :  { %v494_v37 = vpop.f32.mrf.mxu1  ;;  %v964_v38 = vor.u32 1.1754944e-38, %v963_v61  ;;  %vm962_vm5 = vcmp.eq.f32.partialorder %v961_v0, 8.507059e+37  ;;  %v1796_v61 = vld [vmem:[%s3297_s2 + $0xf8] sm:$0xff] }
 0x1b4   :  { %v495_v59 = vadd.f32 %v2766_v49, %v494_v37  ;;  %2072 = vmatmul.msk.f32.gmra.mxu3 %vm1446_vm11, %v1150_v36  ;;  %v940_v41 = vmul.f32 %v2193_v27, %v939_v35  ;;  %1810 = vmatpush.msrb.mxu0 %v1799_v34 }
 0x1b5   :  { %2093 = vmatpush.msra.mxu1 %v1799_v34 }
 0x1b6   :  { %v2195_v43 = vpop.eup %2194  ;;  %v2011_v44 = vmul.f32 -1.442695, %v495_v59  ;;  %1246 = vrot.lane.b32.xlu1 %v495_v59, %s2243_s17  ;;  %v941_v45 = vadd.f32 %v2193_v27, %v940_v41 }
 0x1b7   :  { %v2197_v46 = vpop.eup %2196  ;;  %v2815_v47 = vadd.f32 1.0, %v2195_v43 }
 0x1b8   :  { %v953_v52 = vmul.f32 %v2197_v46, %v2801_v28  ;;  %2198 = vpow2.f32 %v2011_v44  ;;  %v945_v53 = vsel %vm944_vm14, %v2193_v27, %v941_v45  ;;  %vm958_vm2 = vweird.f32 %v2197_v46 }
 0x1b9   :  { %2200 = vrcp.f32 %v2815_v47  ;;  %2030 = vmatmul.msk.f32.gmra.mxu2 %vm81_vm1, %v1219_v51  ;;  %v950_v54 = vsel %vm947_vm15, %v949_v50, %v945_v53  ;;  %vm959_vm4 = vmor %vm957_vm3, %vm958_vm2  ;;  %v978_v15 = vand.u32 2147483648, %v2815_v47  ;;  %v976_v18 = vand.u32 2147483647, %v2815_v47  ;;  %v1225_v50 = vpop.permute.xlu2 %1224 }
 0x1ba   :  { %v954_v55 = vsub.f32 1.0, %v953_v52  ;;  %v1151_v56 = vmul.f32 %v950_v54, %v33_v48  ;;  %vm972_vm7 = vweird.f32 %v2815_v47  ;;  %v1798_v48 = vld [vmem:[%s3297_s2 + $0x108] sm:$0xff]  ;;  %v1797_v54 = vld [vmem:[%s3297_s2 + $0x100] sm:$0xff] }
 0x1bb   :  { %v497_v60 = vpop.f32.mrf.mxu1  ;;  %v979_v25 = vor.u32 1.1754944e-38, %v978_v15  ;;  %vm977_vm9 = vcmp.eq.f32.partialorder %v976_v18, 8.507059e+37  ;;  %1811 = vmatpush.msrb.mxu0 %v1798_v48  ;;  %2094 = vmatpush.msra.mxu1 %v1798_v48  ;;  %v1792_v18 = vld [vmem:[%s3297_s2 + $0xd8] sm:$0xff] }
 0x1bc   :  { %v498_v62 = vadd.f32 %v2766_v49, %v497_v60  ;;  %2073 = vmatmul.msk.f32.gmra.mxu3 %vm1446_vm11, %v1151_v56  ;;  %v955_v63 = vmul.f32 %v2197_v46, %v954_v55  ;;  %v2890_v55 = vpop.f32.mrf.mxu3 }
 0x1bd   :  { %1812 = vmatpush.msrb.mxu0 %v1797_v54  ;;  %2095 = vmatpush.msra.mxu1 %v1797_v54  ;;  %v39_v54 = vld [vmem:[%s3299_s0 + $0xc8] sm:$0xff] }
 0x1be   :  { %v2199_v1 = vpop.eup %2198  ;;  %v2012_v39 = vmul.f32 -1.442695, %v498_v62  ;;  %1248 = vrot.lane.b32.xlu2 %v498_v62, %s2243_s17  ;;  %v956_v3 = vadd.f32 %v2197_v46, %v955_v63 }
 0x1bf   :  { %v2201_v4 = vpop.eup %2200  ;;  %v2837_v5 = vadd.f32 1.0, %v2199_v1  ;;  %1813 = vmatpush.msrb.mxu0 %v1796_v61  ;;  %v1795_v1 = vld [vmem:[%s3297_s2 + $0xf0] sm:$0xff]  ;;  %2096 = vmatpush.msra.mxu1 %v1796_v61 }
 0x1c0   :  { %v968_v7 = vmul.f32 %v2201_v4, %v2815_v47  ;;  %2202 = vpow2.f32 %v2012_v39  ;;  %v1221_v8 = vpop.permute.xlu0 %1220  ;;  %v960_v9 = vsel %vm959_vm4, %v2197_v46, %v956_v3  ;;  %vm973_vm6 = vweird.f32 %v2201_v4  ;;  %v36_v46 = vld [vmem:[%s3299_s0 + $0xb0] sm:$0xff] }
 0x1c1   :  { %2204 = vrcp.f32 %v2837_v5  ;;  %2031 = vmatmul.msk.f32.gmra.mxu2 %vm81_vm1, %v1221_v8  ;;  %v965_v10 = vsel %vm962_vm5, %v964_v38, %v960_v9  ;;  %vm974_vm8 = vmor %vm972_vm7, %vm973_vm6  ;;  %v993_v36 = vand.u32 2147483648, %v2837_v5  ;;  %v991_v59 = vand.u32 2147483647, %v2837_v5  ;;  %1814 = vmatpush.msrb.mxu0 %v1795_v1  ;;  %v37_v38 = vld [vmem:[%s3299_s0 + $0xb8] sm:$0xff]  ;;  %v1794_v8 = vld [vmem:[%s3297_s2 + $0xe8] sm:$0xff] }
 0x1c2   :  { %v969_v11 = vsub.f32 1.0, %v968_v7  ;;  %v1152_v12 = vmul.f32 %v965_v10, %v34_v6  ;;  %vm987_vm10 = vweird.f32 %v2837_v5  ;;  %2097 = vmatpush.msra.mxu1 %v1795_v1 }
 0x1c3   :  { %v500_v14 = vpop.f32.mrf.mxu1  ;;  %v994_v47 = vor.u32 1.1754944e-38, %v993_v36  ;;  %vm992_vm13 = vcmp.eq.f32.partialorder %v991_v59, 8.507059e+37  ;;  %1815 = vmatpush.msrb.mxu0 %v1794_v8 }
 0x1c4   :  { %v501_v16 = vadd.f32 %v2766_v49, %v500_v14  ;;  %2074 = vmatmul.msk.f32.gmra.mxu3 %vm1446_vm11, %v1152_v12  ;;  %v970_v17 = vmul.f32 %v2201_v4, %v969_v11  ;;  %2098 = vmatpush.msra.mxu1 %v1794_v8 }
 0x1c5   :  { %1816 = vmatpush.msrb.mxu0 %v1793_v13 }
 0x1c6   :  { %v2203_v19 = vpop.eup %2202  ;;  %v2013_v20 = vmul.f32 -1.442695, %v501_v16  ;;  %1250 = vrot.lane.b32.xlu0 %v501_v16, %s2243_s17  ;;  %v971_v21 = vadd.f32 %v2201_v4, %v970_v17  ;;  %2099 = vmatpush.msra.mxu1 %v1793_v13 }
 0x1c7   :  { %v2205_v22 = vpop.eup %2204  ;;  %v2854_v23 = vadd.f32 1.0, %v2203_v19  ;;  %v2922_v19 = vpop.f32.mrf.mxu3  ;;  %1817 = vmatpush.msrb.mxu0 %v1792_v18 }
 0x1c8   :  { %v983_v27 = vmul.f32 %v2205_v22, %v2837_v5  ;;  %2206 = vpow2.f32 %v2013_v20  ;;  %v1223_v28 = vpop.permute.xlu1 %1222  ;;  %v975_v29 = vsel %vm974_vm8, %v2201_v4, %v971_v21  ;;  %vm988_vm0 = vweird.f32 %v2205_v22  ;;  %2100 = vmatpush.msra.mxu1 %v1792_v18 }
 0x1c9   :  { %2208 = vrcp.f32 %v2854_v23  ;;  %2032 = vmatmul.msk.f32.gmra.mxu2 %vm81_vm1, %v1223_v28  ;;  %v980_v30 = vsel %vm977_vm9, %v979_v25, %v975_v29  ;;  %vm989_vm12 = vmor %vm987_vm10, %vm988_vm0  ;;  %v1008_v60 = vand.u32 2147483648, %v2854_v23  ;;  %v1006_v0 = vand.u32 2147483647, %v2854_v23 }
 0x1ca   :  { %v984_v31 = vsub.f32 1.0, %v983_v27  ;;  %v1153_v32 = vmul.f32 %v980_v30, %v35_v24  ;;  %vm1002_vm15 = vweird.f32 %v2854_v23  ;;  %v38_v30 = vld [vmem:[%s3299_s0 + $0xc0] sm:$0xff] }
 0x1cb   :  { %v503_v35 = vpop.f32.mrf.mxu1  ;;  %v1009_v7 = vor.u32 1.1754944e-38, %v1008_v60  ;;  %vm1007_vm3 = vcmp.eq.f32.partialorder %v1006_v0, 8.507059e+37 }
 0x1cc   :  { %v504_v37 = vadd.f32 %v2766_v49, %v503_v35  ;;  %2075 = vmatmul.msk.f32.gmra.mxu3 %vm1446_vm11, %v1153_v32  ;;  %v985_v40 = vmul.f32 %v2205_v22, %v984_v31  ;;  %v1790_v32 = vld [vmem:[%s3297_s2 + $0xc8] sm:$0xff] }
 0x1ce   :  { %v2207_v41 = vpop.eup %2206  ;;  %v2014_v42 = vmul.f32 -1.442695, %v504_v37  ;;  %1252 = vrot.lane.b32.xlu1 %v504_v37, %s2243_s17  ;;  %v986_v43 = vadd.f32 %v2205_v22, %v985_v40  ;;  %v1789_v37 = vld [vmem:[%s3297_s2 + $0xc0] sm:$0xff] }
 0x1cf   :  { %v2209_v44 = vpop.eup %2208  ;;  %v2876_v45 = vadd.f32 1.0, %v2207_v41  ;;  %v2953_v48 = vpop.f32.mrf.mxu3 }
 0x1d0   :  { %v998_v51 = vmul.f32 %v2209_v44, %v2854_v23  ;;  %2210 = vpow2.f32 %v2014_v42  ;;  %v990_v52 = vsel %vm989_vm12, %v2205_v22, %v986_v43  ;;  %vm1003_vm14 = vweird.f32 %v2209_v44  ;;  %v1791_v23 = vld [vmem:[%s3297_s2 + $0xd0] sm:$0xff]  ;;  %v1788_v43 = vld [vmem:[%s3297_s2 + $0xb8] sm:$0xff] }
 0x1d1   :  { %2212 = vrcp.f32 %v2876_v45  ;;  %2033 = vmatmul.msk.f32.gmra.mxu2 %vm81_vm1, %v1225_v50  ;;  %v995_v53 = vsel %vm992_vm13, %v994_v47, %v990_v52  ;;  %vm1004_vm2 = vmor %vm1002_vm15, %vm1003_vm14  ;;  %v1023_v17 = vand.u32 2147483648, %v2876_v45  ;;  %v1021_v22 = vand.u32 2147483647, %v2876_v45  ;;  %1818 = vmatpush.msrb.mxu0 %v1791_v23 }
 0x1d2   :  { %v999_v56 = vsub.f32 1.0, %v998_v51  ;;  %v1154_v57 = vmul.f32 %v995_v53, %v36_v46  ;;  %vm1017_vm5 = vweird.f32 %v2876_v45  ;;  %2101 = vmatpush.msra.mxu1 %v1791_v23 }
 0x1d3   :  { %v506_v58 = vpop.f32.mrf.mxu1  ;;  %v1024_v31 = vor.u32 1.1754944e-38, %v1023_v17  ;;  %vm1022_vm7 = vcmp.eq.f32.partialorder %v1021_v22, 8.507059e+37  ;;  %1819 = vmatpush.msrb.mxu0 %v1790_v32 }
 0x1d4   :  { %v507_v62 = vadd.f32 %v2766_v49, %v506_v58  ;;  %2076 = vmatmul.msk.f32.gmra.mxu3 %vm1446_vm11, %v1154_v57  ;;  %v1000_v63 = vmul.f32 %v2209_v44, %v999_v56  ;;  %2102 = vmatpush.msra.mxu1 %v1790_v32  ;;  %v1231_v57 = vpop.permute.xlu2 %1230 }
 0x1d5   :  { %1820 = vmatpush.msrb.mxu0 %v1789_v37 }
 0x1d6   :  { %v2211_v39 = vpop.eup %2210  ;;  %v2015_v3 = vmul.f32 -1.442695, %v507_v62  ;;  %1254 = vrot.lane.b32.xlu2 %v507_v62, %s2243_s17  ;;  %v1001_v4 = vadd.f32 %v2209_v44, %v1000_v63  ;;  %2103 = vmatpush.msra.mxu1 %v1789_v37 }
 0x1d7   :  { %v2213_v5 = vpop.eup %2212  ;;  %v2904_v6 = vadd.f32 1.0, %v2211_v39  ;;  %1821 = vmatpush.msrb.mxu0 %v1788_v43 }
 0x1d8   :  { %v1013_v9 = vmul.f32 %v2213_v5, %v2876_v45  ;;  %2214 = vpow2.f32 %v2015_v3  ;;  %v1227_v10 = vpop.permute.xlu0 %1226  ;;  %v1005_v11 = vsel %vm1004_vm2, %v2209_v44, %v1001_v4  ;;  %vm1018_vm4 = vweird.f32 %v2213_v5  ;;  %2104 = vmatpush.msra.mxu1 %v1788_v43 }
 0x1d9   :  { %2216 = vrcp.f32 %v2904_v6  ;;  %2034 = vmatmul.msk.f32.gmra.mxu2 %vm81_vm1, %v1227_v10  ;;  %v1010_v12 = vsel %vm1007_vm3, %v1009_v7, %v1005_v11  ;;  %vm1019_vm6 = vmor %vm1017_vm5, %vm1018_vm4  ;;  %v1038_v42 = vand.u32 2147483648, %v2904_v6  ;;  %v1036_v46 = vand.u32 2147483647, %v2904_v6  ;;  %v2976_v11 = vpop.f32.mrf.mxu3 }
 0x1da   :  { %v1014_v14 = vsub.f32 1.0, %v1013_v9  ;;  %v1155_v15 = vmul.f32 %v1010_v12, %v37_v38  ;;  %vm1032_vm9 = vweird.f32 %v2904_v6  ;;  %v40_v9 = vld [vmem:[%s3299_s0 + $0xd0] sm:$0xff] }
 0x1db   :  { %v509_v16 = vpop.f32.mrf.mxu1  ;;  %v1039_v56 = vor.u32 1.1754944e-38, %v1038_v42  ;;  %vm1037_vm10 = vcmp.eq.f32.partialorder %v1036_v46, 8.507059e+37 }
 0x1dc   :  { %v510_v20 = vadd.f32 %v2766_v49, %v509_v16  ;;  %2077 = vmatmul.msk.f32.gmra.mxu3 %vm1446_vm11, %v1155_v15  ;;  %v1015_v21 = vmul.f32 %v2213_v5, %v1014_v14 }
 0x1de   :  { %v2215_v24 = vpop.eup %2214  ;;  %v2016_v25 = vmul.f32 -1.442695, %v510_v20  ;;  %1256 = vrot.lane.b32.xlu0 %v510_v20, %s2243_s17  ;;  %v1016_v27 = vadd.f32 %v2213_v5, %v1015_v21 }
 0x1df   :  { %v2217_v28 = vpop.eup %2216  ;;  %v2932_v29 = vadd.f32 1.0, %v2215_v24 }
 0x1e0   :  { %v1028_v33 = vmul.f32 %v2217_v28, %v2904_v6  ;;  %2218 = vpow2.f32 %v2016_v25  ;;  %v1229_v34 = vpop.permute.xlu1 %1228  ;;  %v1020_v35 = vsel %vm1019_vm6, %v2213_v5, %v1016_v27  ;;  %vm1033_vm8 = vweird.f32 %v2217_v28 }
 0x1e1   :  { %2220 = vrcp.f32 %v2932_v29  ;;  %2035 = vmatmul.msk.f32.gmra.mxu2 %vm81_vm1, %v1229_v34  ;;  %v1025_v36 = vsel %vm1022_vm7, %v1024_v31, %v1020_v35  ;;  %vm1034_vm0 = vmor %vm1032_vm9, %vm1033_vm8  ;;  %v1053_v1 = vand.u32 2147483648, %v2932_v29  ;;  %v1051_v4 = vand.u32 2147483647, %v2932_v29 }
 0x1e2   :  { %v1029_v40 = vsub.f32 1.0, %v1028_v33  ;;  %v1156_v59 = vmul.f32 %v1025_v36, %v38_v30  ;;  %vm1047_vm13 = vweird.f32 %v2932_v29  ;;  %v41_v30 = vld [vmem:[%s3299_s0 + $0xd8] sm:$0xff]  ;;  %v2995_v36 = vpop.f32.mrf.mxu3 }
 0x1e3   :  { %v512_v41 = vpop.f32.mrf.mxu1  ;;  %v1054_v10 = vor.u32 1.1754944e-38, %v1053_v1  ;;  %vm1052_vm15 = vcmp.eq.f32.partialorder %v1051_v4, 8.507059e+37 }
 0x1e4   :  { %v513_v44 = vadd.f32 %v2766_v49, %v512_v41  ;;  %2078 = vmatmul.msk.f32.gmra.mxu3 %vm1446_vm11, %v1156_v59  ;;  %v1030_v45 = vmul.f32 %v2217_v28, %v1029_v40  ;;  %v3000_v41 = vld [vmem:[%s3297_s2 + $0x13a] ss:$0 sm:$0xff] }
 0x1e6   :  { %v2219_v47 = vpop.eup %2218  ;;  %v2017_v50 = vmul.f32 -1.442695, %v513_v44  ;;  %1258 = vrot.lane.b32.xlu1 %v513_v44, %s2243_s17  ;;  %v1031_v51 = vadd.f32 %v2217_v28, %v1030_v45 }
 0x1e7   :  { %v2221_v52 = vpop.eup %2220  ;;  %v2957_v53 = vadd.f32 1.0, %v2219_v47 }
 0x1e8   :  { %v1043_v58 = vmul.f32 %v2221_v52, %v2932_v29  ;;  %2222 = vpow2.f32 %v2017_v50  ;;  %v1035_v60 = vsel %vm1034_vm0, %v2217_v28, %v1031_v51  ;;  %vm1048_vm12 = vweird.f32 %v2221_v52  ;;  %v3010_v50 = vld [vmem:[%s3297_s2 + $0x13d] ss:$0 sm:$0xff] }
 0x1e9   :  { %2224 = vrcp.f32 %v2957_v53  ;;  %2036 = vmatmul.msk.f32.gmra.mxu2 %vm81_vm1, %v1231_v57  ;;  %v1040_v61 = vsel %vm1037_vm10, %v1039_v56, %v1035_v60  ;;  %vm1049_vm14 = vmor %vm1047_vm13, %vm1048_vm12  ;;  %v1068_v20 = vand.u32 2147483648, %v2957_v53  ;;  %v1066_v23 = vand.u32 2147483647, %v2957_v53 }
 0x1ea   :  { %v1044_v62 = vsub.f32 1.0, %v1043_v58  ;;  %v1157_v63 = vmul.f32 %v1040_v61, %v39_v54  ;;  %vm1062_vm3 = vweird.f32 %v2957_v53  ;;  %v1237_v58 = vpop.permute.xlu2 %1236  ;;  %v3025_v4 = vpop.f32.mrf.mxu3 }
 0x1eb   :  { %v515_v0 = vpop.f32.mrf.mxu1  ;;  %v1069_v31 = vor.u32 1.1754944e-38, %v1068_v20  ;;  %vm1067_vm5 = vcmp.eq.f32.partialorder %v1066_v23, 8.507059e+37 }
 0x1ec   :  { %v516_v39 = vadd.f32 %v2766_v49, %v515_v0  ;;  %2079 = vmatmul.msk.f32.gmra.mxu3 %vm1446_vm11, %v1157_v63  ;;  %v1045_v3 = vmul.f32 %v2221_v52, %v1044_v62 }
 0x1ee   :  { %v2223_v5 = vpop.eup %2222  ;;  %v2018_v6 = vmul.f32 -1.442695, %v516_v39  ;;  %1260 = vrot.lane.b32.xlu2 %v516_v39, %s2243_s17  ;;  %v1046_v38 = vadd.f32 %v2221_v52, %v1045_v3 }
 0x1ef   :  { %v2225_v7 = vpop.eup %2224  ;;  %v2971_v8 = vadd.f32 1.0, %v2223_v5 }
 0x1f0   :  { %v1058_v12 = vmul.f32 %v2225_v7, %v2957_v53  ;;  %2226 = vpow2.f32 %v2018_v6  ;;  %v1233_v13 = vpop.permute.xlu0 %1232  ;;  %v1050_v14 = vsel %vm1049_vm14, %v2221_v52, %v1046_v38  ;;  %vm1063_vm2 = vweird.f32 %v2225_v7 }
 0x1f1   :  { %2228 = vrcp.f32 %v2971_v8  ;;  %2037 = vmatmul.msk.f32.gmra.mxu2 %vm81_vm1, %v1233_v13  ;;  %v1055_v15 = vsel %vm1052_vm15, %v1054_v10, %v1050_v14  ;;  %vm1064_vm4 = vmor %vm1062_vm3, %vm1063_vm2  ;;  %v1083_v42 = vand.u32 2147483648, %v2971_v8  ;;  %v1081_v46 = vand.u32 2147483647, %v2971_v8  ;;  %v43_v14 = vld [vmem:[%s3299_s0 + $0xe8] sm:$0xff] }
 0x1f2   :  { %v1059_v16 = vsub.f32 1.0, %v1058_v12  ;;  %v1158_v17 = vmul.f32 %v1055_v15, %v40_v9  ;;  %vm1077_vm7 = vweird.f32 %v2971_v8 }
 0x1f3   :  { %v518_v18 = vpop.f32.mrf.mxu1  ;;  %v1084_v57 = vor.u32 1.1754944e-38, %v1083_v42  ;;  %vm1082_vm9 = vcmp.eq.f32.partialorder %v1081_v46, 8.507059e+37 }
 0x1f4   :  { %v519_v21 = vadd.f32 %v2766_v49, %v518_v18  ;;  %2080 = vmatmul.msk.f32.gmra.mxu3 %vm1446_vm11, %v1158_v17  ;;  %v1060_v22 = vmul.f32 %v2225_v7, %v1059_v16 }
 0x1f6   :  { %v2227_v24 = vpop.eup %2226  ;;  %v2019_v25 = vmul.f32 -1.442695, %v519_v21  ;;  %1262 = vrot.lane.b32.xlu0 %v519_v21, %s2243_s17  ;;  %v1061_v27 = vadd.f32 %v2225_v7, %v1060_v22 }
 0x1f7   :  { %v2229_v28 = vpop.eup %2228  ;;  %v2987_v29 = vadd.f32 1.0, %v2227_v24 }
 0x1f8   :  { %v1073_v32 = vmul.f32 %v2229_v28, %v2971_v8  ;;  %2230 = vpow2.f32 %v2019_v25  ;;  %v1235_v33 = vpop.permute.xlu1 %1234  ;;  %v1065_v34 = vsel %vm1064_vm4, %v2225_v7, %v1061_v27  ;;  %vm1078_vm6 = vweird.f32 %v2229_v28 }
 0x1f9   :  { %2232 = vrcp.f32 %v2987_v29  ;;  %2038 = vmatmul.msk.f32.gmra.mxu2 %vm81_vm1, %v1235_v33  ;;  %v1070_v35 = vsel %vm1067_vm5, %v1069_v31, %v1065_v34  ;;  %vm1079_vm8 = vmor %vm1077_vm7, %vm1078_vm6  ;;  %v1098_v3 = vand.u32 2147483648, %v2987_v29  ;;  %v1096_v38 = vand.u32 2147483647, %v2987_v29  ;;  %v44_v34 = vld [vmem:[%s3299_s0 + $0xf0] sm:$0xff] }
 0x1fa   :  { %v1074_v37 = vsub.f32 1.0, %v1073_v32  ;;  %v1159_v40 = vmul.f32 %v1070_v35, %v41_v30  ;;  %vm1092_vm12 = vweird.f32 %v2987_v29  ;;  %v3042_v30 = vpop.f32.mrf.mxu3 }
 0x1fb   :  { %v521_v59 = vpop.f32.mrf.mxu1  ;;  %v1099_v15 = vor.u32 1.1754944e-38, %v1098_v3  ;;  %vm1097_vm14 = vcmp.eq.f32.partialorder %v1096_v38, 8.507059e+37 }
 0x1fc   :  { %v522_v43 = vadd.f32 %v2766_v49, %v521_v59  ;;  %v1350_v44 = vpop.f32.mrf.mxu2  ;;  %2081 = vmatmul.msk.f32.gmra.mxu3 %vm1446_vm11, %v1159_v40  ;;  %v1075_v45 = vmul.f32 %v2229_v28, %v1074_v37 }
 0x1fd   :  { %v1561_v47 = vadd.f32 %v2833_v2, %v1350_v44  ;;  %v42_v2 = vld [vmem:[%s3299_s0 + $0xe0] sm:$0xff] }
 0x1fe   :  { %v2231_v51 = vpop.eup %2230  ;;  %v2020_v52 = vmul.f32 -1.442695, %v522_v43  ;;  %1264 = vrot.lane.b32.xlu1 %v522_v43, %s2243_s17  ;;  %v1076_v53 = vadd.f32 %v2229_v28, %v1075_v45 }
 0x1ff   :  { %v2233_v49 = vpop.eup %2232  ;;  %v3014_v54 = vadd.f32 1.0, %v2231_v51  ;;  %v1658_v56 = vadd.f32 %v3000_v41, %v1561_v47 }
 0x200   :  { %v1088_v60 = vmul.f32 %v2233_v49, %v2987_v29  ;;  %2234 = vpow2.f32 %v2020_v52  ;;  %v1080_v61 = vsel %vm1079_vm8, %v2229_v28, %v1076_v53  ;;  %vm1093_vm10 = vweird.f32 %v2233_v49 }
 0x201   :  { %2236 = vrcp.f32 %v3014_v54  ;;  %2039 = vmatmul.msk.f32.gmra.mxu2 %vm81_vm1, %v1237_v58  ;;  %v1085_v62 = vsel %vm1082_vm9, %v1084_v57, %v1080_v61  ;;  %vm1690_vm0 = vcmp.gt.f32.partialorder %v1658_v56, 0.0  ;;  %v1724_v63 = vmul.f32 %v3010_v50, %v1658_v56  ;;  %vm1094_vm13 = vmor %vm1092_vm12, %vm1093_vm10  ;;  %v1243_v58 = vpop.permute.xlu2 %1242 }
 0x202   :  { %v1089_v0 = vsub.f32 1.0, %v1088_v60  ;;  %v1160_v1 = vmul.f32 %v1085_v62, %v42_v2  ;;  %v1113_v24 = vand.u32 2147483648, %v3014_v54  ;;  %v1111_v28 = vand.u32 2147483647, %v3014_v54  ;;  %v1587_v57 = vpop.f32.mrf.mxu3 }
 0x203   :  { %v1756_v39 = vsel %vm1690_vm0, %v1658_v56, %v1724_v63  ;;  %vm1107_vm3 = vweird.f32 %v3014_v54  ;;  %v45_v56 = vld [vmem:[%s3299_s0 + $0xf8] sm:$0xff] }
 0x204   :  { %v1353_v5 = vpop.f32.mrf.mxu2  ;;  %2082 = vmatmul.msk.f32.gmra.mxu3 %vm1446_vm11, %v1160_v1  ;;  %1822 = vmatmul.f32.vlgmr.msrb.gmra.mxu0 %v1756_v39  ;;  %v1090_v6 = vmul.f32 %v2233_v49, %v1089_v0  ;;  %v1114_v35 = vor.u32 1.1754944e-38, %v1113_v24  ;;  %vm1112_vm5 = vcmp.eq.f32.partialorder %v1111_v28, 8.507059e+37 }
 0x205   :  { %v1564_v7 = vadd.f32 %v2859_v26, %v1353_v5 }
 0x206   :  { %v2235_v8 = vpop.eup %2234  ;;  %v1091_v9 = vadd.f32 %v2233_v49, %v1090_v6 }
 0x207   :  { %v2237_v10 = vpop.eup %2236  ;;  %v651_v12 = vadd.f32 1.0, %v2235_v8  ;;  %v1659_v13 = vadd.f32 %v3000_v41, %v1564_v7 }
 0x208   :  { %v1103_v16 = vmul.f32 %v2237_v10, %v3014_v54  ;;  %v1239_v17 = vpop.permute.xlu0 %1238  ;;  %v1095_v18 = vsel %vm1094_vm13, %v2233_v49, %v1091_v9  ;;  %vm1108_vm2 = vweird.f32 %v2237_v10 }
 0x209   :  { %2238 = vrcp.f32 %v651_v12  ;;  %2040 = vmatmul.msk.f32.gmra.mxu2 %vm81_vm1, %v1239_v17  ;;  %v1100_v26 = vsel %vm1097_vm14, %v1099_v15, %v1095_v18  ;;  %vm1691_vm15 = vcmp.gt.f32.partialorder %v1659_v13, 0.0  ;;  %v1725_v20 = vmul.f32 %v3010_v50, %v1659_v13  ;;  %vm1109_vm4 = vmor %vm1107_vm3, %vm1108_vm2 }
 0x20a   :  { %v1104_v21 = vsub.f32 1.0, %v1103_v16  ;;  %v1161_v22 = vmul.f32 %v1100_v26, %v43_v14  ;;  %v1128_v46 = vand.u32 2147483648, %v651_v12  ;;  %v1126_v52 = vand.u32 2147483647, %v651_v12  ;;  %v1590_v6 = vpop.f32.mrf.mxu3 }
 0x20b   :  { %v1757_v23 = vsel %vm1691_vm15, %v1659_v13, %v1725_v20  ;;  %vm1122_vm8 = vweird.f32 %v651_v12 }
 0x20c   :  { %v1356_v25 = vpop.f32.mrf.mxu2  ;;  %2083 = vmatmul.msk.f32.gmra.mxu3 %vm1446_vm11, %v1161_v22  ;;  %1825 = vmatmul.f32.gmra.mxu0 %v1757_v23  ;;  %v1105_v27 = vmul.f32 %v2237_v10, %v1104_v21  ;;  %v1129_v2 = vor.u32 1.1754944e-38, %v1128_v46  ;;  %vm1127_vm0 = vcmp.eq.f32.partialorder %v1126_v52, 8.507059e+37 }
 0x20d   :  { %v1567_v29 = vadd.f32 %v2890_v55, %v1356_v25 }
 0x20e   :  { %v1106_v31 = vadd.f32 %v2237_v10, %v1105_v27 }
 0x20f   :  { %v2239_v32 = vpop.eup %2238  ;;  %v1660_v33 = vadd.f32 %v3000_v41, %v1567_v29 }
 0x210   :  { %v1118_v37 = vmul.f32 %v2239_v32, %v651_v12  ;;  %v1241_v40 = vpop.permute.xlu1 %1240  ;;  %v1110_v59 = vsel %vm1109_vm4, %v2237_v10, %v1106_v31  ;;  %vm1123_vm7 = vweird.f32 %v2239_v32 }
 0x211   :  { %2041 = vmatmul.msk.f32.gmra.mxu2 %vm81_vm1, %v1241_v40  ;;  %v1115_v55 = vsel %vm1112_vm5, %v1114_v35, %v1110_v59  ;;  %vm1692_vm6 = vcmp.gt.f32.partialorder %v1660_v33, 0.0  ;;  %v1726_v42 = vmul.f32 %v3010_v50, %v1660_v33  ;;  %vm1124_vm9 = vmor %vm1122_vm8, %vm1123_vm7 }
 0x212   :  { %v1119_v43 = vsub.f32 1.0, %v1118_v37  ;;  %v1162_v44 = vmul.f32 %v1115_v55, %v44_v34  ;;  %v1593_v13 = vpop.f32.mrf.mxu3 }
 0x213   :  { %v1758_v45 = vsel %vm1692_vm6, %v1660_v33, %v1726_v42 }
 0x214   :  { %v1359_v47 = vpop.f32.mrf.mxu2  ;;  %2084 = vmatmul.msk.f32.gmra.mxu3 %vm1446_vm11, %v1162_v44  ;;  %1828 = vmatmul.f32.gmra.mxu0 %v1758_v45  ;;  %v1120_v51 = vmul.f32 %v2239_v32, %v1119_v43 }
 0x215   :  { %v1570_v53 = vadd.f32 %v2922_v19, %v1359_v47 }
 0x216   :  { %v1121_v49 = vadd.f32 %v2239_v32, %v1120_v51 }
 0x217   :  { %v1661_v54 = vadd.f32 %v3000_v41, %v1570_v53 }
 0x218   :  { %v1125_v60 = vsel %vm1124_vm9, %v2239_v32, %v1121_v49  ;;  %v1249_v17 = vpop.permute.xlu2 %1248 }
 0x219   :  { %2042 = vmatmul.msk.f32.gmra.mxu2 %vm81_vm1, %v1243_v58  ;;  %v1130_v61 = vsel %vm1127_vm0, %v1129_v2, %v1125_v60  ;;  %vm1693_vm10 = vcmp.gt.f32.partialorder %v1661_v54, 0.0  ;;  %v1727_v19 = vmul.f32 %v3010_v50, %v1661_v54 }
 0x21a   :  { %v1163_v62 = vmul.f32 %v1130_v61, %v45_v56  ;;  %v1596_v21 = vpop.f32.mrf.mxu3 }
 0x21b   :  { %v1759_v63 = vsel %vm1693_vm10, %v1661_v54, %v1727_v19 }
 0x21c   :  { %v1362_v0 = vpop.f32.mrf.mxu2  ;;  %2085 = vmatmul.msk.f32.gmra.mxu3 %vm1446_vm11, %v1163_v62  ;;  %1831 = vmatmul.f32.gmra.mxu0 %v1759_v63 }
 0x21d   :  { %v1573_v1 = vadd.f32 %v2953_v48, %v1362_v0 }
 0x21f   :  { %v1662_v39 = vadd.f32 %v3000_v41, %v1573_v1 }
 0x220   :  { %v1245_v3 = vpop.permute.xlu0 %1244 }
 0x221   :  { %2043 = vmatmul.msk.f32.gmra.mxu2 %vm81_vm1, %v1245_v3  ;;  %vm1694_vm12 = vcmp.gt.f32.partialorder %v1662_v39, 0.0  ;;  %v1728_v5 = vmul.f32 %v3010_v50, %v1662_v39 }
 0x222   :  { %v1599_v29 = vpop.f32.mrf.mxu3 }
 0x223   :  { %v1760_v38 = vsel %vm1694_vm12, %v1662_v39, %v1728_v5 }
 0x224   :  { %v1365_v7 = vpop.f32.mrf.mxu2  ;;  %1834 = vmatmul.f32.gmra.mxu0 %v1760_v38 }
 0x225   :  { %v1576_v8 = vadd.f32 %v2976_v11, %v1365_v7 }
 0x227   :  { %v1663_v9 = vadd.f32 %v3000_v41, %v1576_v8 }
 0x228   :  { %v1247_v10 = vpop.permute.xlu1 %1246 }
 0x229   :  { %2044 = vmatmul.msk.f32.gmra.mxu2 %vm81_vm1, %v1247_v10  ;;  %vm1695_vm11 = vcmp.gt.f32.partialorder %v1663_v9, 0.0  ;;  %v1729_v48 = vmul.f32 %v3010_v50, %v1663_v9 }
 0x22a   :  { %v1602_v40 = vpop.f32.mrf.mxu3 }
 0x22b   :  { %v1761_v12 = vsel %vm1695_vm11, %v1663_v9, %v1729_v48 }
 0x22c   :  { %v1368_v14 = vpop.f32.mrf.mxu2  ;;  %1837 = vmatmul.f32.gmra.mxu0 %v1761_v12 }
 0x22d   :  { %v1579_v15 = vadd.f32 %v2995_v36, %v1368_v14 }
 0x22f   :  { %v1664_v16 = vadd.f32 %v3000_v41, %v1579_v15 }
 0x230   :  { %v1255_v37 = vpop.permute.xlu2 %1254 }
 0x231   :  { %2045 = vmatmul.msk.f32.gmra.mxu2 %vm81_vm1, %v1249_v17  ;;  %vm1696_vm13 = vcmp.gt.f32.partialorder %v1664_v16, 0.0  ;;  %v1730_v11 = vmul.f32 %v3010_v50, %v1664_v16 }
 0x232   :  { %v1605_v47 = vpop.f32.mrf.mxu3 }
 0x233   :  { %v1762_v18 = vsel %vm1696_vm13, %v1664_v16, %v1730_v11 }
 0x234   :  { %v1371_v26 = vpop.f32.mrf.mxu2  ;;  %1840 = vmatmul.f32.gmra.mxu0 %v1762_v18 }
 0x235   :  { %v1582_v20 = vadd.f32 %v3025_v4, %v1371_v26 }
 0x237   :  { %v1665_v22 = vadd.f32 %v3000_v41, %v1582_v20  ;;  %v3103_v20 = vld [vmem:[%s3297_s2 + $0x13b] ss:$0 sm:$0xff] }
 0x238   :  { %v1251_v23 = vpop.permute.xlu0 %1250 }
 0x239   :  { %2046 = vmatmul.msk.f32.gmra.mxu2 %vm81_vm1, %v1251_v23  ;;  %vm1697_vm14 = vcmp.gt.f32.partialorder %v1665_v22, 0.0  ;;  %v1731_v36 = vmul.f32 %v3010_v50, %v1665_v22 }
 0x23a   :  { %v1608_v58 = vpop.f32.mrf.mxu3 }
 0x23b   :  { %v1763_v24 = vsel %vm1697_vm14, %v1665_v22, %v1731_v36 }
 0x23c   :  { %v1374_v25 = vpop.f32.mrf.mxu2  ;;  %1843 = vmatmul.f32.gmra.mxu0 %v1763_v24 }
 0x23d   :  { %v1585_v27 = vadd.f32 %v3042_v30, %v1374_v25 }
 0x23f   :  { %v1666_v28 = vadd.f32 %v3000_v41, %v1585_v27 }
 0x240   :  { %v1253_v31 = vpop.permute.xlu1 %1252 }
 0x241   :  { %2047 = vmatmul.msk.f32.gmra.mxu2 %vm81_vm1, %v1253_v31  ;;  %vm1698_vm15 = vcmp.gt.f32.partialorder %v1666_v28, 0.0  ;;  %v1732_v4 = vmul.f32 %v3010_v50, %v1666_v28 }
 0x242   :  { %v1611_v39 = vpop.f32.mrf.mxu3 }
 0x243   :  { %v1764_v32 = vsel %vm1698_vm15, %v1666_v28, %v1732_v4 }
 0x244   :  { %v1377_v33 = vpop.f32.mrf.mxu2  ;;  %1846 = vmatmul.f32.gmra.mxu0 %v1764_v32 }
 0x245   :  { %v1588_v34 = vadd.f32 %v1587_v57, %v1377_v33 }
 0x247   :  { %v1667_v35 = vadd.f32 %v3000_v41, %v1588_v34 }
 0x248   :  { %v1261_v61 = vpop.permute.xlu2 %1260 }
 0x249   :  { %2048 = vmatmul.msk.f32.gmra.mxu2 %vm81_vm1, %v1255_v37  ;;  %vm1699_vm2 = vcmp.gt.f32.partialorder %v1667_v35, 0.0  ;;  %v1733_v30 = vmul.f32 %v3010_v50, %v1667_v35 }
 0x24a   :  { %v1614_v48 = vpop.f32.mrf.mxu3 }
 0x24b   :  { %v1765_v59 = vsel %vm1699_vm2, %v1667_v35, %v1733_v30 }
 0x24c   :  { %v1380_v55 = vpop.f32.mrf.mxu2  ;;  %1849 = vmatmul.f32.gmra.mxu0 %v1765_v59 }
 0x24d   :  { %v1591_v42 = vadd.f32 %v1590_v6, %v1380_v55 }
 0x24f   :  { %v1668_v43 = vadd.f32 %v3000_v41, %v1591_v42 }
 0x250   :  { %v1257_v44 = vpop.permute.xlu0 %1256 }
 0x251   :  { %2049 = vmatmul.msk.f32.gmra.mxu2 %vm81_vm1, %v1257_v44  ;;  %vm1700_vm3 = vcmp.gt.f32.partialorder %v1668_v43, 0.0  ;;  %v1734_v45 = vmul.f32 %v3010_v50, %v1668_v43 }
 0x252   :  { %v1617_v11 = vpop.f32.mrf.mxu3 }
 0x253   :  { %v1766_v46 = vsel %vm1700_vm3, %v1668_v43, %v1734_v45 }
 0x254   :  { %v1383_v51 = vpop.f32.mrf.mxu2  ;;  %1852 = vmatmul.f32.gmra.mxu0 %v1766_v46 }
 0x255   :  { %v1594_v52 = vadd.f32 %v1593_v13, %v1383_v51 }
 0x257   :  { %v1669_v53 = vadd.f32 %v3000_v41, %v1594_v52 }
 0x258   :  { %v1259_v49 = vpop.permute.xlu1 %1258 }
 0x259   :  { %2050 = vmatmul.msk.f32.gmra.mxu2 %vm81_vm1, %v1259_v49  ;;  %vm1701_vm4 = vcmp.gt.f32.partialorder %v1669_v53, 0.0  ;;  %v1735_v54 = vmul.f32 %v3010_v50, %v1669_v53 }
 0x25a   :  { %v1620_v28 = vpop.f32.mrf.mxu3 }
 0x25b   :  { %v1767_v56 = vsel %vm1701_vm4, %v1669_v53, %v1735_v54 }
 0x25c   :  { %v1386_v2 = vpop.f32.mrf.mxu2  ;;  %1855 = vmatmul.f32.gmra.mxu0 %v1767_v56 }
 0x25d   :  { %v1597_v57 = vadd.f32 %v1596_v21, %v1386_v2 }
 0x25f   :  { %v1670_v60 = vadd.f32 %v3000_v41, %v1597_v57 }
 0x261   :  { %2051 = vmatmul.msk.f32.gmra.mxu2 %vm81_vm1, %v1261_v61  ;;  %vm1702_vm5 = vcmp.gt.f32.partialorder %v1670_v60, 0.0  ;;  %v1736_v19 = vmul.f32 %v3010_v50, %v1670_v60 }
 0x262   :  { %v1623_v30 = vpop.f32.mrf.mxu3 }
 0x263   :  { %v1768_v62 = vsel %vm1702_vm5, %v1670_v60, %v1736_v19 }
 0x264   :  { %v1389_v63 = vpop.f32.mrf.mxu2  ;;  %1858 = vmatmul.f32.gmra.mxu0 %v1768_v62 }
 0x265   :  { %v1600_v0 = vadd.f32 %v1599_v29, %v1389_v63 }
 0x267   :  { %v1671_v1 = vadd.f32 %v3000_v41, %v1600_v0 }
 0x268   :  { %v1263_v3 = vpop.permute.xlu0 %1262 }
 0x269   :  { %2052 = vmatmul.msk.f32.gmra.mxu2 %vm81_vm1, %v1263_v3  ;;  %vm1703_vm6 = vcmp.gt.f32.partialorder %v1671_v1, 0.0  ;;  %v1737_v5 = vmul.f32 %v3010_v50, %v1671_v1 }
 0x26a   :  { %v1626_v51 = vpop.f32.mrf.mxu3 }
 0x26b   :  { %v1769_v6 = vsel %vm1703_vm6, %v1671_v1, %v1737_v5 }
 0x26c   :  { %v1392_v38 = vpop.f32.mrf.mxu2  ;;  %1861 = vmatmul.f32.gmra.mxu0 %v1769_v6 }
 0x26d   :  { %v1603_v7 = vadd.f32 %v1602_v40, %v1392_v38 }
 0x26f   :  { %v1672_v8 = vadd.f32 %v3000_v41, %v1603_v7 }
 0x270   :  { %v1265_v9 = vpop.permute.xlu1 %1264 }
 0x271   :  { %2053 = vmatmul.msk.f32.gmra.mxu2 %vm81_vm1, %v1265_v9  ;;  %vm1704_vm7 = vcmp.gt.f32.partialorder %v1672_v8, 0.0  ;;  %v1738_v10 = vmul.f32 %v3010_v50, %v1672_v8  ;;  %vm1919_vm1 = vcmask 130048  }
 0x272   :  { %v1629_v61 = vpop.f32.mrf.mxu3 }
 0x273   :  { %v1770_v12 = vsel %vm1704_vm7, %v1672_v8, %v1738_v10 }
 0x274   :  { %v1395_v13 = vpop.f32.mrf.mxu2  ;;  %1864 = vmatmul.f32.gmra.mxu0 %v1770_v12 }
 0x275   :  { %v1606_v14 = vadd.f32 %v1605_v47, %v1395_v13 }
 0x277   :  { %v1673_v15 = vadd.f32 %v3000_v41, %v1606_v14 }
 0x279   :  { %vm1705_vm8 = vcmp.gt.f32.partialorder %v1673_v15, 0.0  ;;  %v1739_v16 = vmul.f32 %v3010_v50, %v1673_v15 }
 0x27a   :  { %v1632_v38 = vpop.f32.mrf.mxu3 }
 0x27b   :  { %v1771_v17 = vsel %vm1705_vm8, %v1673_v15, %v1739_v16 }
 0x27c   :  { %v1398_v18 = vpop.f32.mrf.mxu2  ;;  %1867 = vmatmul.f32.gmra.mxu0 %v1771_v17 }
 0x27d   :  { %v1609_v26 = vadd.f32 %v1608_v58, %v1398_v18 }
 0x27f   :  { %v1674_v21 = vadd.f32 %v3000_v41, %v1609_v26 }
 0x281   :  { %v1823_v22 = vpop.f32.mrf.mxu0  ;;  %vm1706_vm9 = vcmp.gt.f32.partialorder %v1674_v21, 0.0  ;;  %v1740_v23 = vmul.f32 %v3010_v50, %v1674_v21 }
 0x282   :  { %v1824_v36 = vadd.f32 %v3103_v20, %v1823_v22  ;;  %v1635_v15 = vpop.f32.mrf.mxu3 }
 0x283   :  { %v1772_v24 = vsel %vm1706_vm9, %v1674_v21, %v1740_v23 }
 0x284   :  { %1920 = vst.msk [vmem:[%s3300_s3] sm:$0xff] %vm1919_vm1, %v1824_v36  ;;  %v1401_v25 = vpop.f32.mrf.mxu2  ;;  %1870 = vmatmul.f32.gmra.mxu0 %v1772_v24 }
 0x285   :  { %v1612_v27 = vadd.f32 %v1611_v39, %v1401_v25 }
 0x287   :  { %v1675_v29 = vadd.f32 %v3000_v41, %v1612_v27 }
 0x289   :  { %v1826_v31 = vpop.f32.mrf.mxu0  ;;  %vm1707_vm0 = vcmp.gt.f32.partialorder %v1675_v29, 0.0  ;;  %v1741_v4 = vmul.f32 %v3010_v50, %v1675_v29 }
 0x28a   :  { %v1827_v32 = vadd.f32 %v3103_v20, %v1826_v31  ;;  %v1638_v24 = vpop.f32.mrf.mxu3 }
 0x28b   :  { %v1773_v33 = vsel %vm1707_vm0, %v1675_v29, %v1741_v4 }
 0x28c   :  { %1921 = vst.msk [vmem:[%s3300_s3 + $0x8] sm:$0xff] %vm1919_vm1, %v1827_v32  ;;  %v1404_v34 = vpop.f32.mrf.mxu2  ;;  %1873 = vmatmul.f32.gmra.mxu0 %v1773_v33 }
 0x28d   :  { %v1615_v35 = vadd.f32 %v1614_v48, %v1404_v34 }
 0x28f   :  { %v1676_v37 = vadd.f32 %v3000_v41, %v1615_v35 }
 0x291   :  { %v1829_v40 = vpop.f32.mrf.mxu0  ;;  %vm1708_vm10 = vcmp.gt.f32.partialorder %v1676_v37, 0.0  ;;  %v1742_v59 = vmul.f32 %v3010_v50, %v1676_v37 }
 0x292   :  { %v1830_v55 = vadd.f32 %v3103_v20, %v1829_v40  ;;  %v1641_v35 = vpop.f32.mrf.mxu3 }
 0x293   :  { %v1774_v42 = vsel %vm1708_vm10, %v1676_v37, %v1742_v59 }
 0x294   :  { %1922 = vst.msk [vmem:[%s3300_s3 + $0x10] sm:$0xff] %vm1919_vm1, %v1830_v55  ;;  %v1407_v43 = vpop.f32.mrf.mxu2  ;;  %1876 = vmatmul.f32.gmra.mxu0 %v1774_v42 }
 0x295   :  { %v1618_v44 = vadd.f32 %v1617_v11, %v1407_v43 }
 0x297   :  { %v1677_v45 = vadd.f32 %v3000_v41, %v1618_v44 }
 0x299   :  { %v1832_v46 = vpop.f32.mrf.mxu0  ;;  %vm1709_vm12 = vcmp.gt.f32.partialorder %v1677_v45, 0.0  ;;  %v1743_v47 = vmul.f32 %v3010_v50, %v1677_v45 }
 0x29a   :  { %v1833_v52 = vadd.f32 %v3103_v20, %v1832_v46  ;;  %v1644_v46 = vpop.f32.mrf.mxu3 }
 0x29b   :  { %v1775_v53 = vsel %vm1709_vm12, %v1677_v45, %v1743_v47 }
 0x29c   :  { %1923 = vst.msk [vmem:[%s3300_s3 + $0x18] sm:$0xff] %vm1919_vm1, %v1833_v52  ;;  %v1410_v49 = vpop.f32.mrf.mxu2  ;;  %1879 = vmatmul.f32.gmra.mxu0 %v1775_v53 }
 0x29d   :  { %v1621_v54 = vadd.f32 %v1620_v28, %v1410_v49 }
 0x29f   :  { %v1678_v56 = vadd.f32 %v3000_v41, %v1621_v54 }
 0x2a1   :  { %v1835_v2 = vpop.f32.mrf.mxu0  ;;  %vm1710_vm11 = vcmp.gt.f32.partialorder %v1678_v56, 0.0  ;;  %v1744_v57 = vmul.f32 %v3010_v50, %v1678_v56 }
 0x2a2   :  { %v1836_v58 = vadd.f32 %v3103_v20, %v1835_v2 }
 0x2a3   :  { %v1776_v60 = vsel %vm1710_vm11, %v1678_v56, %v1744_v57  ;;  %v1647_v57 = vpop.f32.mrf.mxu3 }
 0x2a4   :  { %1924 = vst.msk [vmem:[%s3300_s3 + $0x20] sm:$0xff] %vm1919_vm1, %v1836_v58  ;;  %v1413_v19 = vpop.f32.mrf.mxu2  ;;  %1882 = vmatmul.f32.gmra.mxu0 %v1776_v60 }
 0x2a5   :  { %v1624_v62 = vadd.f32 %v1623_v30, %v1413_v19 }
 0x2a7   :  { %v1679_v63 = vadd.f32 %v3000_v41, %v1624_v62 }
 0x2a9   :  { %v1838_v0 = vpop.f32.mrf.mxu0  ;;  %vm1711_vm13 = vcmp.gt.f32.partialorder %v1679_v63, 0.0  ;;  %v1745_v1 = vmul.f32 %v3010_v50, %v1679_v63 }
 0x2aa   :  { %v1839_v39 = vadd.f32 %v3103_v20, %v1838_v0 }
 0x2ab   :  { %v1777_v3 = vsel %vm1711_vm13, %v1679_v63, %v1745_v1 }
 0x2ac   :  { %1925 = vst.msk [vmem:[%s3300_s3 + $0x28] sm:$0xff] %vm1919_vm1, %v1839_v39  ;;  %v1416_v5 = vpop.f32.mrf.mxu2  ;;  %1885 = vmatmul.f32.gmra.mxu0 %v1777_v3  ;;  %v1650_v3 = vpop.f32.mrf.mxu3 }
 0x2ad   :  { %v1627_v6 = vadd.f32 %v1626_v51, %v1416_v5 }
 0x2af   :  { %v1680_v7 = vadd.f32 %v3000_v41, %v1627_v6 }
 0x2b1   :  { %v1841_v8 = vpop.f32.mrf.mxu0  ;;  %vm1712_vm14 = vcmp.gt.f32.partialorder %v1680_v7, 0.0  ;;  %v1746_v9 = vmul.f32 %v3010_v50, %v1680_v7 }
 0x2b2   :  { %v1842_v10 = vadd.f32 %v3103_v20, %v1841_v8 }
 0x2b3   :  { %v1778_v48 = vsel %vm1712_vm14, %v1680_v7, %v1746_v9 }
 0x2b4   :  { %1926 = vst.msk [vmem:[%s3300_s3 + $0x30] sm:$0xff] %vm1919_vm1, %v1842_v10  ;;  %v1419_v12 = vpop.f32.mrf.mxu2  ;;  %1888 = vmatmul.f32.gmra.mxu0 %v1778_v48 }
 0x2b5   :  { %v1630_v13 = vadd.f32 %v1629_v61, %v1419_v12 }
 0x2b7   :  { %v1681_v14 = vadd.f32 %v3000_v41, %v1630_v13  ;;  %v1653_v13 = vpop.f32.mrf.mxu3 }
 0x2b9   :  { %v1844_v16 = vpop.f32.mrf.mxu0  ;;  %vm1713_vm15 = vcmp.gt.f32.partialorder %v1681_v14, 0.0  ;;  %v1747_v17 = vmul.f32 %v3010_v50, %v1681_v14 }
 0x2ba   :  { %v1845_v11 = vadd.f32 %v3103_v20, %v1844_v16 }
 0x2bb   :  { %v1779_v18 = vsel %vm1713_vm15, %v1681_v14, %v1747_v17 }
 0x2bc   :  { %1927 = vst.msk [vmem:[%s3300_s3 + $0x38] sm:$0xff] %vm1919_vm1, %v1845_v11  ;;  %v1422_v26 = vpop.f32.mrf.mxu2  ;;  %1891 = vmatmul.f32.gmra.mxu0 %v1779_v18 }
 0x2bd   :  { %v1633_v21 = vadd.f32 %v1632_v38, %v1422_v26 }
 0x2bf   :  { %v1682_v22 = vadd.f32 %v3000_v41, %v1633_v21 }
 0x2c1   :  { %v1847_v23 = vpop.f32.mrf.mxu0  ;;  %vm1714_vm2 = vcmp.gt.f32.partialorder %v1682_v22, 0.0  ;;  %v1748_v36 = vmul.f32 %v3010_v50, %v1682_v22 }
 0x2c2   :  { %v1848_v25 = vadd.f32 %v3103_v20, %v1847_v23 }
 0x2c3   :  { %v1780_v27 = vsel %vm1714_vm2, %v1682_v22, %v1748_v36 }
 0x2c4   :  { %1928 = vst.msk [vmem:[%s3300_s3 + $0x40] sm:$0xff] %vm1919_vm1, %v1848_v25  ;;  %v1425_v28 = vpop.f32.mrf.mxu2  ;;  %1894 = vmatmul.f32.gmra.mxu0 %v1780_v27 }
 0x2c5   :  { %v1636_v29 = vadd.f32 %v1635_v15, %v1425_v28 }
 0x2c7   :  { %v1683_v31 = vadd.f32 %v3000_v41, %v1636_v29 }
 0x2c9   :  { %v1850_v4 = vpop.f32.mrf.mxu0  ;;  %vm1715_vm3 = vcmp.gt.f32.partialorder %v1683_v31, 0.0  ;;  %v1749_v32 = vmul.f32 %v3010_v50, %v1683_v31 }
 0x2ca   :  { %v1851_v33 = vadd.f32 %v3103_v20, %v1850_v4 }
 0x2cb   :  { %v1781_v34 = vsel %vm1715_vm3, %v1683_v31, %v1749_v32 }
 0x2cc   :  { %1929 = vst.msk [vmem:[%s3300_s3 + $0x48] sm:$0xff] %vm1919_vm1, %v1851_v33  ;;  %v1428_v37 = vpop.f32.mrf.mxu2  ;;  %1897 = vmatmul.f32.gmra.mxu0 %v1781_v34 }
 0x2cd   :  { %v1639_v30 = vadd.f32 %v1638_v24, %v1428_v37 }
 0x2cf   :  { %v1684_v40 = vadd.f32 %v3000_v41, %v1639_v30 }
 0x2d1   :  { %v1853_v59 = vpop.f32.mrf.mxu0  ;;  %vm1716_vm4 = vcmp.gt.f32.partialorder %v1684_v40, 0.0  ;;  %v1750_v55 = vmul.f32 %v3010_v50, %v1684_v40 }
 0x2d2   :  { %v1854_v42 = vadd.f32 %v3103_v20, %v1853_v59 }
 0x2d3   :  { %v1782_v43 = vsel %vm1716_vm4, %v1684_v40, %v1750_v55 }
 0x2d4   :  { %1930 = vst.msk [vmem:[%s3300_s3 + $0x50] sm:$0xff] %vm1919_vm1, %v1854_v42  ;;  %v1431_v44 = vpop.f32.mrf.mxu2  ;;  %1900 = vmatmul.f32.gmra.mxu0 %v1782_v43 }
 0x2d5   :  { %v1642_v45 = vadd.f32 %v1641_v35, %v1431_v44 }
 0x2d7   :  { %v1685_v47 = vadd.f32 %v3000_v41, %v1642_v45 }
 0x2d9   :  { %v1856_v51 = vpop.f32.mrf.mxu0  ;;  %vm1717_vm5 = vcmp.gt.f32.partialorder %v1685_v47, 0.0  ;;  %v1751_v52 = vmul.f32 %v3010_v50, %v1685_v47 }
 0x2da   :  { %v1857_v53 = vadd.f32 %v3103_v20, %v1856_v51 }
 0x2db   :  { %v1783_v49 = vsel %vm1717_vm5, %v1685_v47, %v1751_v52 }
 0x2dc   :  { %1931 = vst.msk [vmem:[%s3300_s3 + $0x58] sm:$0xff] %vm1919_vm1, %v1857_v53  ;;  %v1434_v54 = vpop.f32.mrf.mxu2  ;;  %1903 = vmatmul.f32.gmra.mxu0 %v1783_v49 }
 0x2dd   :  { %v1645_v56 = vadd.f32 %v1644_v46, %v1434_v54 }
 0x2df   :  { %v1686_v2 = vadd.f32 %v3000_v41, %v1645_v56 }
 0x2e1   :  { %v1859_v58 = vpop.f32.mrf.mxu0  ;;  %vm1718_vm6 = vcmp.gt.f32.partialorder %v1686_v2, 0.0  ;;  %v1752_v60 = vmul.f32 %v3010_v50, %v1686_v2 }
 0x2e2   :  { %v1860_v61 = vadd.f32 %v3103_v20, %v1859_v58 }
 0x2e3   :  { %v1784_v19 = vsel %vm1718_vm6, %v1686_v2, %v1752_v60 }
 0x2e4   :  { %1932 = vst.msk [vmem:[%s3300_s3 + $0x60] sm:$0xff] %vm1919_vm1, %v1860_v61  ;;  %v1437_v62 = vpop.f32.mrf.mxu2  ;;  %1906 = vmatmul.f32.gmra.mxu0 %v1784_v19 }
 0x2e5   :  { %v1648_v63 = vadd.f32 %v1647_v57, %v1437_v62 }
 0x2e7   :  { %v1687_v0 = vadd.f32 %v3000_v41, %v1648_v63 }
 0x2e9   :  { %v1862_v1 = vpop.f32.mrf.mxu0  ;;  %vm1719_vm7 = vcmp.gt.f32.partialorder %v1687_v0, 0.0  ;;  %v1753_v39 = vmul.f32 %v3010_v50, %v1687_v0 }
 0x2ea   :  { %v1863_v5 = vadd.f32 %v3103_v20, %v1862_v1 }
 0x2eb   :  { %v1785_v6 = vsel %vm1719_vm7, %v1687_v0, %v1753_v39 }
 0x2ec   :  { %1933 = vst.msk [vmem:[%s3300_s3 + $0x68] sm:$0xff] %vm1919_vm1, %v1863_v5  ;;  %v1440_v38 = vpop.f32.mrf.mxu2  ;;  %1909 = vmatmul.f32.gmra.mxu0 %v1785_v6 }
 0x2ed   :  { %v1651_v7 = vadd.f32 %v1650_v3, %v1440_v38 }
 0x2ef   :  { %v1688_v8 = vadd.f32 %v3000_v41, %v1651_v7 }
 0x2f1   :  { %vm1720_vm8 = vcmp.gt.f32.partialorder %v1688_v8, 0.0  ;;  %v1754_v9 = vmul.f32 %v3010_v50, %v1688_v8  ;;  %v1865_v10 = vpop.f32.mrf.mxu0 }
 0x2f2   :  { %v1866_v48 = vadd.f32 %v3103_v20, %v1865_v10 }
 0x2f3   :  { %v1786_v12 = vsel %vm1720_vm8, %v1688_v8, %v1754_v9 }
 0x2f4   :  { %1934 = vst.msk [vmem:[%s3300_s3 + $0x70] sm:$0xff] %vm1919_vm1, %v1866_v48  ;;  %v1443_v14 = vpop.f32.mrf.mxu2  ;;  %1912 = vmatmul.f32.vlgmr.msra.gmra.mxu1 %v1786_v12 }
 0x2f5   :  { %v1654_v15 = vadd.f32 %v1653_v13, %v1443_v14 }
 0x2f7   :  { %v1689_v16 = vadd.f32 %v3000_v41, %v1654_v15 }
 0x2f9   :  { %v1868_v17 = vpop.f32.mrf.mxu0  ;;  %vm1721_vm9 = vcmp.gt.f32.partialorder %v1689_v16, 0.0  ;;  %v1755_v11 = vmul.f32 %v3010_v50, %v1689_v16 }
 0x2fa   :  { %v1869_v18 = vadd.f32 %v3103_v20, %v1868_v17 }
 0x2fb   :  { %v1787_v26 = vsel %vm1721_vm9, %v1689_v16, %v1755_v11 }
 0x2fc   :  { %1935 = vst.msk [vmem:[%s3300_s3 + $0x78] sm:$0xff] %vm1919_vm1, %v1869_v18  ;;  %1915 = vmatmul.f32.gmra.mxu1 %v1787_v26 }
 0x301   :  { %v1871_v21 = vpop.f32.mrf.mxu0 }
 0x302   :  { %v1872_v22 = vadd.f32 %v3103_v20, %v1871_v21 }
 0x304   :  { %1936 = vst.msk [vmem:[%s3300_s3 + $0x80] sm:$0xff] %vm1919_vm1, %v1872_v22 }
 0x309   :  { %v1874_v41 = vpop.f32.mrf.mxu0 }
 0x30a   :  { %v1875_v50 = vadd.f32 %v3103_v20, %v1874_v41 }
 0x30c   :  { %1937 = vst.msk [vmem:[%s3300_s3 + $0x88] sm:$0xff] %vm1919_vm1, %v1875_v50 }
 0x311   :  { %v1877_v23 = vpop.f32.mrf.mxu0 }
 0x312   :  { %v1878_v36 = vadd.f32 %v3103_v20, %v1877_v23 }
 0x314   :  { %1938 = vst.msk [vmem:[%s3300_s3 + $0x90] sm:$0xff] %vm1919_vm1, %v1878_v36 }
 0x319   :  { %v1880_v24 = vpop.f32.mrf.mxu0 }
 0x31a   :  { %v1881_v25 = vadd.f32 %v3103_v20, %v1880_v24 }
 0x31c   :  { %1939 = vst.msk [vmem:[%s3300_s3 + $0x98] sm:$0xff] %vm1919_vm1, %v1881_v25 }
 0x321   :  { %v1883_v27 = vpop.f32.mrf.mxu0 }
 0x322   :  { %v1884_v28 = vadd.f32 %v3103_v20, %v1883_v27 }
 0x324   :  { %1940 = vst.msk [vmem:[%s3300_s3 + $0xa0] sm:$0xff] %vm1919_vm1, %v1884_v28 }
 0x329   :  { %v1886_v29 = vpop.f32.mrf.mxu0 }
 0x32a   :  { %v1887_v31 = vadd.f32 %v3103_v20, %v1886_v29 }
 0x32c   :  { %1941 = vst.msk [vmem:[%s3300_s3 + $0xa8] sm:$0xff] %vm1919_vm1, %v1887_v31 }
 0x331   :  { %v1889_v4 = vpop.f32.mrf.mxu0 }
 0x332   :  { %v1890_v32 = vadd.f32 %v3103_v20, %v1889_v4 }
 0x334   :  { %1942 = vst.msk [vmem:[%s3300_s3 + $0xb0] sm:$0xff] %vm1919_vm1, %v1890_v32 }
 0x339   :  { %v1892_v33 = vpop.f32.mrf.mxu0 }
 0x33a   :  { %v1893_v34 = vadd.f32 %v3103_v20, %v1892_v33 }
 0x33c   :  { %1943 = vst.msk [vmem:[%s3300_s3 + $0xb8] sm:$0xff] %vm1919_vm1, %v1893_v34 }
 0x341   :  { %v1895_v35 = vpop.f32.mrf.mxu0 }
 0x342   :  { %v1896_v37 = vadd.f32 %v3103_v20, %v1895_v35 }
 0x344   :  { %1944 = vst.msk [vmem:[%s3300_s3 + $0xc0] sm:$0xff] %vm1919_vm1, %v1896_v37 }
 0x349   :  { %v1898_v30 = vpop.f32.mrf.mxu0 }
 0x34a   :  { %v1899_v40 = vadd.f32 %v3103_v20, %v1898_v30 }
 0x34c   :  { %1945 = vst.msk [vmem:[%s3300_s3 + $0xc8] sm:$0xff] %vm1919_vm1, %v1899_v40 }
 0x351   :  { %v1901_v59 = vpop.f32.mrf.mxu0 }
 0x352   :  { %v1902_v55 = vadd.f32 %v3103_v20, %v1901_v59 }
 0x354   :  { %1946 = vst.msk [vmem:[%s3300_s3 + $0xd0] sm:$0xff] %vm1919_vm1, %v1902_v55 }
 0x359   :  { %v1904_v42 = vpop.f32.mrf.mxu0 }
 0x35a   :  { %v1905_v43 = vadd.f32 %v3103_v20, %v1904_v42 }
 0x35c   :  { %1947 = vst.msk [vmem:[%s3300_s3 + $0xd8] sm:$0xff] %vm1919_vm1, %v1905_v43 }
 0x361   :  { %v1907_v44 = vpop.f32.mrf.mxu0 }
 0x362   :  { %v1908_v45 = vadd.f32 %v3103_v20, %v1907_v44 }
 0x364   :  { %1948 = vst.msk [vmem:[%s3300_s3 + $0xe0] sm:$0xff] %vm1919_vm1, %v1908_v45 }
 0x369   :  { %v1910_v46 = vpop.f32.mrf.mxu0 }
 0x36a   :  { %v1911_v47 = vadd.f32 %v3103_v20, %v1910_v46 }
 0x36c   :  { %1949 = vst.msk [vmem:[%s3300_s3 + $0xe8] sm:$0xff] %vm1919_vm1, %v1911_v47 }
 0x371   :  { %v1913_v51 = vpop.f32.mrf.mxu1 }
 0x372   :  { %v1914_v52 = vadd.f32 %v3103_v20, %v1913_v51 }
 0x374   :  { %1950 = vst.msk [vmem:[%s3300_s3 + $0xf0] sm:$0xff] %vm1919_vm1, %v1914_v52 }
 0x379   :  { %v1916_v53 = vpop.f32.mrf.mxu1 }
 0x37a   :  { %v1917_v49 = vadd.f32 %v3103_v20, %v1916_v53 }
 0x37c   :  { %1951 = vst.msk [vmem:[%s3300_s3 + $0xf8] sm:$0xff] %vm1919_vm1, %v1917_v49 }

</bundles_post_ra>
